<compile_context>
chip_gen: v7x
topology: tpu7x:2x2x1
jax: 0.10.0
libtpu: 0.0.40
codegen_flags: <defaults>
</compile_context>

<pallas_src>
import math

import numpy as np
import jax
import jax.numpy as jnp
from jax.experimental import pallas as pl
from jax.experimental.pallas import tpu as pltpu

_LANE = 128
_SUB = 8
_MAX_TILE_ROWS = 512        # (512,128) f32 = 256 KiB per input per buffer
_NCORES = 2                 # megacore split (v7x); sequential elsewhere

_EPS = 1e-6
_HALF_LOG_2PI = 0.5 * math.log(2.0 * math.pi)

# -----------------------------------------------------------------------------
# Lanczos lgamma (g=7, n=9) as a single rational in w = 1/z.
#
#   lgamma(z) = 0.5*log(2*pi) + (z-0.5)*log(t) - t + log(A(z)),  t = z + 6.5
#   A(z) = c0 + sum_i c_i / (z + i - 1) = N(w) / D(w),           w = 1/z
#
# N (deg 8) / D (deg 7) coefficients are derived once in float64 here so the
# kernel needs only two Horner chains + one reciprocal + one log per lgamma
# instead of 8 f32 divisions.  Evaluating in w keeps values bounded for large
# counts (no z^8 overflow), since zs >= 0.5 after the standard shift.
# -----------------------------------------------------------------------------
_LANCZOS_G = 7.0
_LANCZOS_COEFS = (
    0.99999999999980993,
    676.5203681218851,
    -1259.1392167224028,
    771.32342877765313,
    -176.61502916214059,
    12.507343278686905,
    -0.13857109526572012,
    9.9843695780195716e-6,
    1.5056327351493116e-7,
)


def _lanczos_rational_in_w():
    c = np.asarray(_LANCZOS_COEFS, dtype=np.float64)

    def prod(factors):
        r = np.array([1.0])
        for f in factors:
            r = np.polymul(r, f)
        return r

    # D(w) = prod_{j=1..7} (j*w + 1)
    den = prod([np.array([float(j), 1.0]) for j in range(1, 8)])
    # N(w) = (c1*w + c0) * D(w) + sum_{j=1..7} c_{j+1} * w * D(w)/(j*w + 1)
    num = np.polymul(np.array([c[1], c[0]]), den)
    for j in range(1, 8):
        pj = prod([np.array([float(k), 1.0]) for k in range(1, 8) if k != j])
        num = np.polyadd(num, np.polymul(np.array([c[j + 1], 0.0]), pj))
    return tuple(float(v) for v in num), tuple(float(v) for v in den)


_LANCZOS_NUM_W, _LANCZOS_DEN_W = _lanczos_rational_in_w()


def _horner(coefs, x):
    # Seed from the two leading scalar coefficients (no full_like broadcast).
    acc = coefs[0] * x + coefs[1]
    for c in coefs[2:]:
        acc = acc * x + c
    return acc


def _lgamma_terms(z, may_shift=True):
    """lgamma(z) = 0.5*log(2*pi) + core + log(num/den)   (z > 0).

    Returns (core, num, den) so callers can fuse several log(num/den) ratios
    into a single EUP log.  `may_shift=False` skips the z<0.5 recurrence for
    arguments known to be >= 1 (e.g. counts + 1).
    """
    if may_shift:
        shift = z < 0.5
        zs = jnp.where(shift, z + 1.0, z)      # recurrence keeps zs >= 0.5
    else:
        zs = z
    w = pl.reciprocal(zs, approx=True)
    num = _horner(_LANCZOS_NUM_W, w)
    den = _horner(_LANCZOS_DEN_W, w)
    t = zs + (_LANCZOS_G - 0.5)
    core = (zs - 0.5) * jnp.log(t) - t
    if may_shift:
        # lgamma(z) = lgamma(z+1) - log(z) where shifted.
        core = core - jnp.where(shift, jnp.log(z), 0.0)
    return core, num, den


def _fold_rows(vals):
    """(T, 128) -> (8, 128) partial sums via plain vreg adds (no XLU reduce)."""
    acc = vals[0:_SUB, :]
    for k in range(1, vals.shape[0] // _SUB):
        acc = acc + vals[k * _SUB:(k + 1) * _SUB, :]
    return acc


# -----------------------------------------------------------------------------
# Kernel: elementwise NB-NLL + Gaussian-NLL, per-lane accumulation per core.
# -----------------------------------------------------------------------------
def _candi_loss_kernel(p_ref, n_ref, mu_ref, var_ref, tc_ref, tp_ref, m_ref,
                       nb_acc_ref, g_acc_ref, cnt_acc_ref):
    @pl.when(pl.program_id(1) == 0)
    def _():
        nb_acc_ref[...] = jnp.zeros_like(nb_acc_ref)
        g_acc_ref[...] = jnp.zeros_like(g_acc_ref)
        cnt_acc_ref[...] = jnp.zeros_like(cnt_acc_ref)

    eps = jnp.float32(_EPS)
    mask = m_ref[...].astype(jnp.float32)

    # --- negative binomial NLL (net +0.5*log(2*pi) constant hoisted) ---
    p = jnp.clip(p_ref[...].astype(jnp.float32), eps, 1.0 - eps)
    n = jnp.maximum(n_ref[...].astype(jnp.float32), eps)
    y = tc_ref[...].astype(jnp.float32)

    c_n, num_n, den_n = _lgamma_terms(n)
    c_y, num_y, den_y = _lgamma_terms(y + 1.0, may_shift=False)  # counts >= 0
    c_ny, num_ny, den_ny = _lgamma_terms(n + y)

    # lgamma(n) + lgamma(y+1) - lgamma(n+y): fuse the three rational logs.
    log_ratio = jnp.log((num_n * num_y * den_ny) *
                        pl.reciprocal(den_n * den_y * num_ny, approx=True))
    nb = ((c_n + c_y - c_ny) + log_ratio
          - n * jnp.log(p) - y * jnp.log(1.0 - p))

    # --- Gaussian NLL (full=True, +0.5*log(2*pi) hoisted) ---
    var = jnp.maximum(var_ref[...].astype(jnp.float32), eps)
    diff = mu_ref[...].astype(jnp.float32) - tp_ref[...].astype(jnp.float32)
    gaus = 0.5 * (jnp.log(var) + diff * diff * pl.reciprocal(var, approx=True))

    nb_acc_ref[0] += _fold_rows(nb * mask)
    g_acc_ref[0] += _fold_rows(gaus * mask)
    cnt_acc_ref[0] += _fold_rows(mask)


# -----------------------------------------------------------------------------
# Wrapper: layout plumbing + final tiny reduction.
# -----------------------------------------------------------------------------
def candi_decoder_loss(p_pred, n_pred, mu_pred, var_pred,
                       true_count, true_pval, obs_map, reduction="mean"):
    cdiv = lambda a, b: -(-a // b)

    total = int(p_pred.size)
    rows_needed = cdiv(total, _LANE)
    rows_per_core = cdiv(rows_needed, _NCORES)
    tile_rows = max(_SUB, min(_MAX_TILE_ROWS, cdiv(rows_per_core, _SUB) * _SUB))
    tiles_per_core = cdiv(rows_per_core, tile_rows)
    rows_padded = _NCORES * tiles_per_core * tile_rows
    pad = rows_padded * _LANE - total

    def prep(x):
        x = jnp.asarray(x).reshape(-1)
        if pad:
            # Zero padding is benign: padded lanes have mask=0 and every term
            # stays finite thanks to the clip/clamp with eps.
            x = jnp.pad(x, (0, pad))
        return x.reshape(rows_padded, _LANE)

    # Native dtypes are kept; the kernel casts to f32 after the load.
    p2, n2, mu2, var2, tc2, tp2 = [
        prep(v) for v in (p_pred, n_pred, mu_pred, var_pred, true_count, true_pval)]
    m2 = prep(jnp.asarray(obs_map, jnp.float32))

    in_spec = pl.BlockSpec((tile_rows, _LANE),
                           lambda c, i: (c * tiles_per_core + i, 0))
    acc_spec = pl.BlockSpec((1, _SUB, _LANE), lambda c, i: (c, 0, 0))
    acc_shape = jax.ShapeDtypeStruct((_NCORES, _SUB, _LANE), jnp.float32)

    n_elem = rows_padded * _LANE
    in_bytes = sum(int(v.size) * v.dtype.itemsize
                   for v in (p2, n2, mu2, var2, tc2, tp2, m2))
    cost = pl.CostEstimate(flops=130 * n_elem,
                           transcendentals=18 * n_elem,
                           bytes_accessed=in_bytes)

    nb_acc, g_acc, cnt_acc = pl.pallas_call(
        _candi_loss_kernel,
        out_shape=(acc_shape, acc_shape, acc_shape),
        grid_spec=pltpu.PrefetchScalarGridSpec(
            num_scalar_prefetch=0,
            grid=(_NCORES, tiles_per_core),
            in_specs=[in_spec] * 7,
            out_specs=[acc_spec] * 3,
        ),
        compiler_params=pltpu.CompilerParams(
            dimension_semantics=("parallel", "arbitrary"),
            vmem_limit_bytes=32 * 1024 * 1024,
        ),
        cost_estimate=cost,
    )(p2, n2, mu2, var2, tc2, tp2, m2)

    nb_sum = jnp.sum(nb_acc)
    g_sum = jnp.sum(g_acc)
    cnt = jnp.sum(cnt_acc)

    # Hoisted per-element constants: one net +0.5*log(2*pi) per masked element
    # in the NB loss (lgamma(n)+lgamma(y+1)-lgamma(n+y)) and one in the
    # Gaussian loss (full=True).
    nb_sum = nb_sum + _HALF_LOG_2PI * cnt
    g_sum = g_sum + _HALF_LOG_2PI * cnt

    if reduction == "mean":
        return nb_sum / cnt, g_sum / cnt
    elif reduction == "sum":
        return nb_sum, g_sum
    # TODO(synk): reduction='none' returns the dynamically-shaped x[obs_map];
    # no static-shape Pallas equivalent.
    raise NotImplementedError("reduction='none' is not supported on TPU")


# -----------------------------------------------------------------------------
if __name__ == "__main__":
    key = jax.random.PRNGKey(0)
    ks = jax.random.split(key, 7)

    # Small shapes consistent with CANDI decoder outputs: (batch, seq, features)
    B, L, F = 2, 8, 32
    shape = (B, L, F)

    p_pred = jax.nn.sigmoid(jax.random.normal(ks[0], shape))            # (0,1)
    n_pred = jax.nn.softplus(jax.random.normal(ks[1], shape)) + 0.1     # > 0
    mu_pred = jax.random.normal(ks[2], shape)
    var_pred = jax.nn.softplus(jax.random.normal(ks[3], shape)) + 0.1   # > 0
    true_count = jnp.floor(jax.random.uniform(ks[4], shape) * 10.0)     # counts
    true_pval = jax.random.normal(ks[5], shape)
    obs_map = jax.random.uniform(ks[6], shape) < 0.5                    # bool mask

    count_loss, pval_loss = candi_decoder_loss(
        p_pred, n_pred, mu_pred, var_pred, true_count, true_pval, obs_map)
    jax.block_until_ready((count_loss, pval_loss))

    # Pure-JAX (non-Pallas) reference, loose tolerance sanity check.
    eps = 1e-6
    pc = jnp.clip(p_pred, eps, 1.0 - eps)
    nc = jnp.maximum(n_pred, eps)
    nb_ref = (jax.lax.lgamma(nc) + jax.lax.lgamma(true_count + 1.0)
              - jax.lax.lgamma(nc + true_count)
              - nc * jnp.log(pc) - true_count * jnp.log(1.0 - pc))
    vc = jnp.maximum(var_pred, eps)
    g_ref = (0.5 * (jnp.log(vc) + (mu_pred - true_pval) ** 2 / vc)
             + 0.5 * math.log(2.0 * math.pi))
    m = obs_map.astype(jnp.float32)
    cnt = jnp.sum(m)
    ref_count = jnp.sum(nb_ref * m) / cnt
    ref_pval = jnp.sum(g_ref * m) / cnt

    assert jnp.allclose(count_loss, ref_count, rtol=5e-3, atol=5e-3), (
        count_loss, ref_count)
    assert jnp.allclose(pval_loss, ref_pval, rtol=5e-3, atol=5e-3), (
        pval_loss, ref_pval)
    print("KERNEL_OK")
</pallas_src>

<mosaic_0001>
module attributes {stable_mosaic.version = 11 : i64} {
  func.func @_candi_loss_kernel(%arg0: i32, %arg1: i32, %arg2: memref<8x128xf32, #tpu.memory_space<vmem>>, %arg3: memref<8x128xf32, #tpu.memory_space<vmem>>, %arg4: memref<8x128xf32, #tpu.memory_space<vmem>>, %arg5: memref<8x128xf32, #tpu.memory_space<vmem>>, %arg6: memref<8x128xf32, #tpu.memory_space<vmem>>, %arg7: memref<8x128xf32, #tpu.memory_space<vmem>>, %arg8: memref<8x128xf32, #tpu.memory_space<vmem>>, %arg9: memref<1x8x128xf32, #tpu.memory_space<vmem>>, %arg10: memref<1x8x128xf32, #tpu.memory_space<vmem>>, %arg11: memref<1x8x128xf32, #tpu.memory_space<vmem>>) attributes {dimension_semantics = [#tpu.dimension_semantics<parallel>, #tpu.dimension_semantics<arbitrary>], iteration_bounds = array<i64: 2, 1>, scalar_prefetch = 0 : i64, scratch_operands = 0 : i64, tpu.core_type = #tpu.core_type<tc>, window_params = [{transform_indices = @transform_0, window_bounds = array<i64: 8, 128>}, {transform_indices = @transform_1, window_bounds = array<i64: 8, 128>}, {transform_indices = @transform_2, window_bounds = array<i64: 8, 128>}, {transform_indices = @transform_3, window_bounds = array<i64: 8, 128>}, {transform_indices = @transform_4, window_bounds = array<i64: 8, 128>}, {transform_indices = @transform_5, window_bounds = array<i64: 8, 128>}, {transform_indices = @transform_6, window_bounds = array<i64: 8, 128>}, {transform_indices = @transform_7, window_bounds = array<i64: 1, 8, 128>}, {transform_indices = @transform_8, window_bounds = array<i64: 1, 8, 128>}, {transform_indices = @transform_9, window_bounds = array<i64: 1, 8, 128>}]} {
    %c0_i32 = arith.constant 0 : i32
    %0 = arith.cmpi eq, %arg1, %c0_i32 : i32
    %1 = arith.extui %0 : i1 to i32
    %c0_i32_0 = arith.constant 0 : i32
    %2 = arith.cmpi ne, %1, %c0_i32_0 : i32
    scf.if %2 {
      %cst_102 = arith.constant 0.000000e+00 : f32
      %251 = vector.broadcast %cst_102 : f32 to vector<1x8x128xf32>
      %c0_103 = arith.constant 0 : index
      %c0_104 = arith.constant 0 : index
      %c0_105 = arith.constant 0 : index
      %252 = vector.load %arg9[%c0_103, %c0_104, %c0_105] : memref<1x8x128xf32, #tpu.memory_space<vmem>>, vector<1x8x128xf32>
      tpu.vector_store %arg9[%c0_103, %c0_104, %c0_105], %251 {strides = array<i32>} : memref<1x8x128xf32, #tpu.memory_space<vmem>>, vector<1x8x128xf32>,
      %cst_106 = arith.constant 0.000000e+00 : f32
      %253 = vector.broadcast %cst_106 : f32 to vector<1x8x128xf32>
      %c0_107 = arith.constant 0 : index
      %c0_108 = arith.constant 0 : index
      %c0_109 = arith.constant 0 : index
      %254 = vector.load %arg10[%c0_107, %c0_108, %c0_109] : memref<1x8x128xf32, #tpu.memory_space<vmem>>, vector<1x8x128xf32>
      tpu.vector_store %arg10[%c0_107, %c0_108, %c0_109], %253 {strides = array<i32>} : memref<1x8x128xf32, #tpu.memory_space<vmem>>, vector<1x8x128xf32>,
      %cst_110 = arith.constant 0.000000e+00 : f32
      %255 = vector.broadcast %cst_110 : f32 to vector<1x8x128xf32>
      %c0_111 = arith.constant 0 : index
      %c0_112 = arith.constant 0 : index
      %c0_113 = arith.constant 0 : index
      %256 = vector.load %arg11[%c0_111, %c0_112, %c0_113] : memref<1x8x128xf32, #tpu.memory_space<vmem>>, vector<1x8x128xf32>
      tpu.vector_store %arg11[%c0_111, %c0_112, %c0_113], %255 {strides = array<i32>} : memref<1x8x128xf32, #tpu.memory_space<vmem>>, vector<1x8x128xf32>,
    } else {
    }
    %c0 = arith.constant 0 : index
    %c0_1 = arith.constant 0 : index
    %3 = vector.load %arg8[%c0, %c0_1] : memref<8x128xf32, #tpu.memory_space<vmem>>, vector<8x128xf32>
    %c0_2 = arith.constant 0 : index
    %c0_3 = arith.constant 0 : index
    %4 = vector.load %arg2[%c0_2, %c0_3] : memref<8x128xf32, #tpu.memory_space<vmem>>, vector<8x128xf32>
    %cst = arith.constant 1.000000e+00 : f32
    %cst_4 = arith.constant 9.99999997E-7 : f32
    %5 = arith.subf %cst, %cst_4 : f32
    %cst_5 = arith.constant 9.99999997E-7 : f32
    %6 = vector.broadcast %cst_5 : f32 to vector<8x128xf32>
    %7 = arith.maximumf %6, %4 : vector<8x128xf32>
    %8 = vector.broadcast %5 : f32 to vector<8x128xf32>
    %9 = arith.minimumf %8, %7 : vector<8x128xf32>
    %c0_6 = arith.constant 0 : index
    %c0_7 = arith.constant 0 : index
    %10 = vector.load %arg3[%c0_6, %c0_7] : memref<8x128xf32, #tpu.memory_space<vmem>>, vector<8x128xf32>
    %cst_8 = arith.constant 9.99999997E-7 : f32
    %11 = vector.broadcast %cst_8 : f32 to vector<8x128xf32>
    %12 = arith.maximumf %10, %11 : vector<8x128xf32>
    %c0_9 = arith.constant 0 : index
    %c0_10 = arith.constant 0 : index
    %13 = vector.load %arg6[%c0_9, %c0_10] : memref<8x128xf32, #tpu.memory_space<vmem>>, vector<8x128xf32>
    %cst_11 = arith.constant 5.000000e-01 : f32
    %14 = vector.broadcast %cst_11 : f32 to vector<8x128xf32>
    %15 = arith.cmpf olt, %12, %14 : vector<8x128xf32>
    %cst_12 = arith.constant 1.000000e+00 : f32
    %16 = vector.broadcast %cst_12 : f32 to vector<8x128xf32>
    %17 = arith.addf %12, %16 : vector<8x128xf32>
    %18 = arith.select %15, %17, %12 : vector<8x128xi1>, vector<8x128xf32>
    %19 = tpu.reciprocal %18 {approx = true} : vector<8x128xf32> -> vector<8x128xf32>
    %cst_13 = arith.constant 3409662.75 : f32
    %20 = vector.broadcast %cst_13 : f32 to vector<8x128xf32>
    %21 = arith.mulf %20, %19 : vector<8x128xf32>
    %cst_14 = arith.constant 0x4A7E0D50 : f32
    %22 = vector.broadcast %cst_14 : f32 to vector<8x128xf32>
    %23 = arith.addf %21, %22 : vector<8x128xf32>
    %24 = arith.mulf %23, %19 : vector<8x128xf32>
    %cst_15 = arith.constant 2222880.5 : f32
    %25 = vector.broadcast %cst_15 : f32 to vector<8x128xf32>
    %26 = arith.addf %24, %25 : vector<8x128xf32>
    %27 = arith.mulf %26, %19 : vector<8x128xf32>
    %cst_16 = arith.constant 678289.688 : f32
    %28 = vector.broadcast %cst_16 : f32 to vector<8x128xf32>
    %29 = arith.addf %27, %28 : vector<8x128xf32>
    %30 = arith.mulf %29, %19 : vector<8x128xf32>
    %cst_17 = arith.constant 129347.258 : f32
    %31 = vector.broadcast %cst_17 : f32 to vector<8x128xf32>
    %32 = arith.addf %30, %31 : vector<8x128xf32>
    %33 = arith.mulf %32, %19 : vector<8x128xf32>
    %cst_18 = arith.constant 15784.8809 : f32
    %34 = vector.broadcast %cst_18 : f32 to vector<8x128xf32>
    %35 = arith.addf %33, %34 : vector<8x128xf32>
    %36 = arith.mulf %35, %19 : vector<8x128xf32>
    %cst_19 = arith.constant 1203.83423 : f32
    %37 = vector.broadcast %cst_19 : f32 to vector<8x128xf32>
    %38 = arith.addf %36, %37 : vector<8x128xf32>
    %39 = arith.mulf %38, %19 : vector<8x128xf32>
    %cst_20 = arith.constant 52.4583321 : f32
    %40 = vector.broadcast %cst_20 : f32 to vector<8x128xf32>
    %41 = arith.addf %39, %40 : vector<8x128xf32>
    %42 = arith.mulf %41, %19 : vector<8x128xf32>
    %cst_21 = arith.constant 1.000000e+00 : f32
    %43 = vector.broadcast %cst_21 : f32 to vector<8x128xf32>
    %44 = arith.addf %42, %43 : vector<8x128xf32>
    %cst_22 = arith.constant 5.040000e+03 : f32
    %45 = vector.broadcast %cst_22 : f32 to vector<8x128xf32>
    %46 = arith.mulf %45, %19 : vector<8x128xf32>
    %cst_23 = arith.constant 1.306800e+04 : f32
    %47 = vector.broadcast %cst_23 : f32 to vector<8x128xf32>
    %48 = arith.addf %46, %47 : vector<8x128xf32>
    %49 = arith.mulf %48, %19 : vector<8x128xf32>
    %cst_24 = arith.constant 1.313200e+04 : f32
    %50 = vector.broadcast %cst_24 : f32 to vector<8x128xf32>
    %51 = arith.addf %49, %50 : vector<8x128xf32>
    %52 = arith.mulf %51, %19 : vector<8x128xf32>
    %cst_25 = arith.constant 6.769000e+03 : f32
    %53 = vector.broadcast %cst_25 : f32 to vector<8x128xf32>
    %54 = arith.addf %52, %53 : vector<8x128xf32>
    %55 = arith.mulf %54, %19 : vector<8x128xf32>
    %cst_26 = arith.constant 1.960000e+03 : f32
    %56 = vector.broadcast %cst_26 : f32 to vector<8x128xf32>
    %57 = arith.addf %55, %56 : vector<8x128xf32>
    %58 = arith.mulf %57, %19 : vector<8x128xf32>
    %cst_27 = arith.constant 3.220000e+02 : f32
    %59 = vector.broadcast %cst_27 : f32 to vector<8x128xf32>
    %60 = arith.addf %58, %59 : vector<8x128xf32>
    %61 = arith.mulf %60, %19 : vector<8x128xf32>
    %cst_28 = arith.constant 2.800000e+01 : f32
    %62 = vector.broadcast %cst_28 : f32 to vector<8x128xf32>
    %63 = arith.addf %61, %62 : vector<8x128xf32>
    %64 = arith.mulf %63, %19 : vector<8x128xf32>
    %cst_29 = arith.constant 1.000000e+00 : f32
    %65 = vector.broadcast %cst_29 : f32 to vector<8x128xf32>
    %66 = arith.addf %64, %65 : vector<8x128xf32>
    %cst_30 = arith.constant 6.500000e+00 : f32
    %67 = vector.broadcast %cst_30 : f32 to vector<8x128xf32>
    %68 = arith.addf %18, %67 : vector<8x128xf32>
    %cst_31 = arith.constant 5.000000e-01 : f32
    %69 = vector.broadcast %cst_31 : f32 to vector<8x128xf32>
    %70 = arith.subf %18, %69 : vector<8x128xf32>
    %71 = math.log %68 : vector<8x128xf32>
    %72 = arith.mulf %70, %71 : vector<8x128xf32>
    %73 = arith.subf %72, %68 : vector<8x128xf32>
    %74 = math.log %12 : vector<8x128xf32>
    %cst_32 = arith.constant 0.000000e+00 : f32
    %75 = vector.broadcast %cst_32 : f32 to vector<8x128xf32>
    %76 = arith.select %15, %74, %75 : vector<8x128xi1>, vector<8x128xf32>
    %77 = arith.subf %73, %76 : vector<8x128xf32>
    %cst_33 = arith.constant 1.000000e+00 : f32
    %78 = vector.broadcast %cst_33 : f32 to vector<8x128xf32>
    %79 = arith.addf %13, %78 : vector<8x128xf32>
    %80 = tpu.reciprocal %79 {approx = true} : vector<8x128xf32> -> vector<8x128xf32>
    %cst_34 = arith.constant 3409662.75 : f32
    %81 = vector.broadcast %cst_34 : f32 to vector<8x128xf32>
    %82 = arith.mulf %81, %80 : vector<8x128xf32>
    %cst_35 = arith.constant 0x4A7E0D50 : f32
    %83 = vector.broadcast %cst_35 : f32 to vector<8x128xf32>
    %84 = arith.addf %82, %83 : vector<8x128xf32>
    %85 = arith.mulf %84, %80 : vector<8x128xf32>
    %cst_36 = arith.constant 2222880.5 : f32
    %86 = vector.broadcast %cst_36 : f32 to vector<8x128xf32>
    %87 = arith.addf %85, %86 : vector<8x128xf32>
    %88 = arith.mulf %87, %80 : vector<8x128xf32>
    %cst_37 = arith.constant 678289.688 : f32
    %89 = vector.broadcast %cst_37 : f32 to vector<8x128xf32>
    %90 = arith.addf %88, %89 : vector<8x128xf32>
    %91 = arith.mulf %90, %80 : vector<8x128xf32>
    %cst_38 = arith.constant 129347.258 : f32
    %92 = vector.broadcast %cst_38 : f32 to vector<8x128xf32>
    %93 = arith.addf %91, %92 : vector<8x128xf32>
    %94 = arith.mulf %93, %80 : vector<8x128xf32>
    %cst_39 = arith.constant 15784.8809 : f32
    %95 = vector.broadcast %cst_39 : f32 to vector<8x128xf32>
    %96 = arith.addf %94, %95 : vector<8x128xf32>
    %97 = arith.mulf %96, %80 : vector<8x128xf32>
    %cst_40 = arith.constant 1203.83423 : f32
    %98 = vector.broadcast %cst_40 : f32 to vector<8x128xf32>
    %99 = arith.addf %97, %98 : vector<8x128xf32>
    %100 = arith.mulf %99, %80 : vector<8x128xf32>
    %cst_41 = arith.constant 52.4583321 : f32
    %101 = vector.broadcast %cst_41 : f32 to vector<8x128xf32>
    %102 = arith.addf %100, %101 : vector<8x128xf32>
    %103 = arith.mulf %102, %80 : vector<8x128xf32>
    %cst_42 = arith.constant 1.000000e+00 : f32
    %104 = vector.broadcast %cst_42 : f32 to vector<8x128xf32>
    %105 = arith.addf %103, %104 : vector<8x128xf32>
    %cst_43 = arith.constant 5.040000e+03 : f32
    %106 = vector.broadcast %cst_43 : f32 to vector<8x128xf32>
    %107 = arith.mulf %106, %80 : vector<8x128xf32>
    %cst_44 = arith.constant 1.306800e+04 : f32
    %108 = vector.broadcast %cst_44 : f32 to vector<8x128xf32>
    %109 = arith.addf %107, %108 : vector<8x128xf32>
    %110 = arith.mulf %109, %80 : vector<8x128xf32>
    %cst_45 = arith.constant 1.313200e+04 : f32
    %111 = vector.broadcast %cst_45 : f32 to vector<8x128xf32>
    %112 = arith.addf %110, %111 : vector<8x128xf32>
    %113 = arith.mulf %112, %80 : vector<8x128xf32>
    %cst_46 = arith.constant 6.769000e+03 : f32
    %114 = vector.broadcast %cst_46 : f32 to vector<8x128xf32>
    %115 = arith.addf %113, %114 : vector<8x128xf32>
    %116 = arith.mulf %115, %80 : vector<8x128xf32>
    %cst_47 = arith.constant 1.960000e+03 : f32
    %117 = vector.broadcast %cst_47 : f32 to vector<8x128xf32>
    %118 = arith.addf %116, %117 : vector<8x128xf32>
    %119 = arith.mulf %118, %80 : vector<8x128xf32>
    %cst_48 = arith.constant 3.220000e+02 : f32
    %120 = vector.broadcast %cst_48 : f32 to vector<8x128xf32>
    %121 = arith.addf %119, %120 : vector<8x128xf32>
    %122 = arith.mulf %121, %80 : vector<8x128xf32>
    %cst_49 = arith.constant 2.800000e+01 : f32
    %123 = vector.broadcast %cst_49 : f32 to vector<8x128xf32>
    %124 = arith.addf %122, %123 : vector<8x128xf32>
    %125 = arith.mulf %124, %80 : vector<8x128xf32>
    %cst_50 = arith.constant 1.000000e+00 : f32
    %126 = vector.broadcast %cst_50 : f32 to vector<8x128xf32>
    %127 = arith.addf %125, %126 : vector<8x128xf32>
    %cst_51 = arith.constant 6.500000e+00 : f32
    %128 = vector.broadcast %cst_51 : f32 to vector<8x128xf32>
    %129 = arith.addf %79, %128 : vector<8x128xf32>
    %cst_52 = arith.constant 5.000000e-01 : f32
    %130 = vector.broadcast %cst_52 : f32 to vector<8x128xf32>
    %131 = arith.subf %79, %130 : vector<8x128xf32>
    %132 = math.log %129 : vector<8x128xf32>
    %133 = arith.mulf %131, %132 : vector<8x128xf32>
    %134 = arith.subf %133, %129 : vector<8x128xf32>
    %135 = arith.addf %12, %13 : vector<8x128xf32>
    %cst_53 = arith.constant 5.000000e-01 : f32
    %136 = vector.broadcast %cst_53 : f32 to vector<8x128xf32>
    %137 = arith.cmpf olt, %135, %136 : vector<8x128xf32>
    %cst_54 = arith.constant 1.000000e+00 : f32
    %138 = vector.broadcast %cst_54 : f32 to vector<8x128xf32>
    %139 = arith.addf %135, %138 : vector<8x128xf32>
    %140 = arith.select %137, %139, %135 : vector<8x128xi1>, vector<8x128xf32>
    %141 = tpu.reciprocal %140 {approx = true} : vector<8x128xf32> -> vector<8x128xf32>
    %cst_55 = arith.constant 3409662.75 : f32
    %142 = vector.broadcast %cst_55 : f32 to vector<8x128xf32>
    %143 = arith.mulf %142, %141 : vector<8x128xf32>
    %cst_56 = arith.constant 0x4A7E0D50 : f32
    %144 = vector.broadcast %cst_56 : f32 to vector<8x128xf32>
    %145 = arith.addf %143, %144 : vector<8x128xf32>
    %146 = arith.mulf %145, %141 : vector<8x128xf32>
    %cst_57 = arith.constant 2222880.5 : f32
    %147 = vector.broadcast %cst_57 : f32 to vector<8x128xf32>
    %148 = arith.addf %146, %147 : vector<8x128xf32>
    %149 = arith.mulf %148, %141 : vector<8x128xf32>
    %cst_58 = arith.constant 678289.688 : f32
    %150 = vector.broadcast %cst_58 : f32 to vector<8x128xf32>
    %151 = arith.addf %149, %150 : vector<8x128xf32>
    %152 = arith.mulf %151, %141 : vector<8x128xf32>
    %cst_59 = arith.constant 129347.258 : f32
    %153 = vector.broadcast %cst_59 : f32 to vector<8x128xf32>
    %154 = arith.addf %152, %153 : vector<8x128xf32>
    %155 = arith.mulf %154, %141 : vector<8x128xf32>
    %cst_60 = arith.constant 15784.8809 : f32
    %156 = vector.broadcast %cst_60 : f32 to vector<8x128xf32>
    %157 = arith.addf %155, %156 : vector<8x128xf32>
    %158 = arith.mulf %157, %141 : vector<8x128xf32>
    %cst_61 = arith.constant 1203.83423 : f32
    %159 = vector.broadcast %cst_61 : f32 to vector<8x128xf32>
    %160 = arith.addf %158, %159 : vector<8x128xf32>
    %161 = arith.mulf %160, %141 : vector<8x128xf32>
    %cst_62 = arith.constant 52.4583321 : f32
    %162 = vector.broadcast %cst_62 : f32 to vector<8x128xf32>
    %163 = arith.addf %161, %162 : vector<8x128xf32>
    %164 = arith.mulf %163, %141 : vector<8x128xf32>
    %cst_63 = arith.constant 1.000000e+00 : f32
    %165 = vector.broadcast %cst_63 : f32 to vector<8x128xf32>
    %166 = arith.addf %164, %165 : vector<8x128xf32>
    %cst_64 = arith.constant 5.040000e+03 : f32
    %167 = vector.broadcast %cst_64 : f32 to vector<8x128xf32>
    %168 = arith.mulf %167, %141 : vector<8x128xf32>
    %cst_65 = arith.constant 1.306800e+04 : f32
    %169 = vector.broadcast %cst_65 : f32 to vector<8x128xf32>
    %170 = arith.addf %168, %169 : vector<8x128xf32>
    %171 = arith.mulf %170, %141 : vector<8x128xf32>
    %cst_66 = arith.constant 1.313200e+04 : f32
    %172 = vector.broadcast %cst_66 : f32 to vector<8x128xf32>
    %173 = arith.addf %171, %172 : vector<8x128xf32>
    %174 = arith.mulf %173, %141 : vector<8x128xf32>
    %cst_67 = arith.constant 6.769000e+03 : f32
    %175 = vector.broadcast %cst_67 : f32 to vector<8x128xf32>
    %176 = arith.addf %174, %175 : vector<8x128xf32>
    %177 = arith.mulf %176, %141 : vector<8x128xf32>
    %cst_68 = arith.constant 1.960000e+03 : f32
    %178 = vector.broadcast %cst_68 : f32 to vector<8x128xf32>
    %179 = arith.addf %177, %178 : vector<8x128xf32>
    %180 = arith.mulf %179, %141 : vector<8x128xf32>
    %cst_69 = arith.constant 3.220000e+02 : f32
    %181 = vector.broadcast %cst_69 : f32 to vector<8x128xf32>
    %182 = arith.addf %180, %181 : vector<8x128xf32>
    %183 = arith.mulf %182, %141 : vector<8x128xf32>
    %cst_70 = arith.constant 2.800000e+01 : f32
    %184 = vector.broadcast %cst_70 : f32 to vector<8x128xf32>
    %185 = arith.addf %183, %184 : vector<8x128xf32>
    %186 = arith.mulf %185, %141 : vector<8x128xf32>
    %cst_71 = arith.constant 1.000000e+00 : f32
    %187 = vector.broadcast %cst_71 : f32 to vector<8x128xf32>
    %188 = arith.addf %186, %187 : vector<8x128xf32>
    %cst_72 = arith.constant 6.500000e+00 : f32
    %189 = vector.broadcast %cst_72 : f32 to vector<8x128xf32>
    %190 = arith.addf %140, %189 : vector<8x128xf32>
    %cst_73 = arith.constant 5.000000e-01 : f32
    %191 = vector.broadcast %cst_73 : f32 to vector<8x128xf32>
    %192 = arith.subf %140, %191 : vector<8x128xf32>
    %193 = math.log %190 : vector<8x128xf32>
    %194 = arith.mulf %192, %193 : vector<8x128xf32>
    %195 = arith.subf %194, %190 : vector<8x128xf32>
    %196 = math.log %135 : vector<8x128xf32>
    %cst_74 = arith.constant 0.000000e+00 : f32
    %197 = vector.broadcast %cst_74 : f32 to vector<8x128xf32>
    %198 = arith.select %137, %196, %197 : vector<8x128xi1>, vector<8x128xf32>
    %199 = arith.subf %195, %198 : vector<8x128xf32>
    %200 = arith.mulf %44, %105 : vector<8x128xf32>
    %201 = arith.mulf %200, %188 : vector<8x128xf32>
    %202 = arith.mulf %66, %127 : vector<8x128xf32>
    %203 = arith.mulf %202, %166 : vector<8x128xf32>
    %204 = tpu.reciprocal %203 {approx = true} : vector<8x128xf32> -> vector<8x128xf32>
    %205 = arith.mulf %201, %204 : vector<8x128xf32>
    %206 = math.log %205 : vector<8x128xf32>
    %207 = arith.addf %77, %134 : vector<8x128xf32>
    %208 = arith.subf %207, %199 : vector<8x128xf32>
    %209 = arith.addf %208, %206 : vector<8x128xf32>
    %210 = math.log %9 : vector<8x128xf32>
    %211 = arith.mulf %12, %210 : vector<8x128xf32>
    %212 = arith.subf %209, %211 : vector<8x128xf32>
    %cst_75 = arith.constant 1.000000e+00 : f32
    %213 = vector.broadcast %cst_75 : f32 to vector<8x128xf32>
    %214 = arith.subf %213, %9 : vector<8x128xf32>
    %215 = math.log %214 : vector<8x128xf32>
    %216 = arith.mulf %13, %215 : vector<8x128xf32>
    %217 = arith.subf %212, %216 : vector<8x128xf32>
    %c0_76 = arith.constant 0 : index
    %c0_77 = arith.constant 0 : index
    %218 = vector.load %arg5[%c0_76, %c0_77] : memref<8x128xf32, #tpu.memory_space<vmem>>, vector<8x128xf32>
    %cst_78 = arith.constant 9.99999997E-7 : f32
    %219 = vector.broadcast %cst_78 : f32 to vector<8x128xf32>
    %220 = arith.maximumf %218, %219 : vector<8x128xf32>
    %c0_79 = arith.constant 0 : index
    %c0_80 = arith.constant 0 : index
    %221 = vector.load %arg4[%c0_79, %c0_80] : memref<8x128xf32, #tpu.memory_space<vmem>>, vector<8x128xf32>
    %c0_81 = arith.constant 0 : index
    %c0_82 = arith.constant 0 : index
    %222 = vector.load %arg7[%c0_81, %c0_82] : memref<8x128xf32, #tpu.memory_space<vmem>>, vector<8x128xf32>
    %223 = arith.subf %221, %222 : vector<8x128xf32>
    %224 = math.log %220 : vector<8x128xf32>
    %225 = arith.mulf %223, %223 : vector<8x128xf32>
    %226 = tpu.reciprocal %220 {approx = true} : vector<8x128xf32> -> vector<8x128xf32>
    %227 = arith.mulf %225, %226 : vector<8x128xf32>
    %228 = arith.addf %224, %227 : vector<8x128xf32>
    %cst_83 = arith.constant 5.000000e-01 : f32
    %229 = vector.broadcast %cst_83 : f32 to vector<8x128xf32>
    %230 = arith.mulf %229, %228 : vector<8x128xf32>
    %c0_84 = arith.constant 0 : index
    %c0_85 = arith.constant 0 : index
    %c0_86 = arith.constant 0 : index
    %231 = vector.load %arg9[%c0_84, %c0_85, %c0_86] : memref<1x8x128xf32, #tpu.memory_space<vmem>>, vector<1x8x128xf32>
    %232 = vector.shape_cast %231 : vector<1x8x128xf32> to vector<8x128xf32>
    %233 = arith.mulf %217, %3 : vector<8x128xf32>
    %234 = arith.addf %232, %233 : vector<8x128xf32>
    %c0_87 = arith.constant 0 : index
    %c0_88 = arith.constant 0 : index
    %c0_89 = arith.constant 0 : index
    %235 = vector.load %arg9[%c0_87, %c0_88, %c0_89] : memref<1x8x128xf32, #tpu.memory_space<vmem>>, vector<1x8x128xf32>
    %236 = vector.shape_cast %235 : vector<1x8x128xf32> to vector<8x128xf32>
    %237 = vector.shape_cast %234 : vector<8x128xf32> to vector<1x8x128xf32>
    tpu.vector_store %arg9[%c0_87, %c0_88, %c0_89], %237 {strides = array<i32>} : memref<1x8x128xf32, #tpu.memory_space<vmem>>, vector<1x8x128xf32>,
    %c0_90 = arith.constant 0 : index
    %c0_91 = arith.constant 0 : index
    %c0_92 = arith.constant 0 : index
    %238 = vector.load %arg10[%c0_90, %c0_91, %c0_92] : memref<1x8x128xf32, #tpu.memory_space<vmem>>, vector<1x8x128xf32>
    %239 = vector.shape_cast %238 : vector<1x8x128xf32> to vector<8x128xf32>
    %240 = arith.mulf %230, %3 : vector<8x128xf32>
    %241 = arith.addf %239, %240 : vector<8x128xf32>
    %c0_93 = arith.constant 0 : index
    %c0_94 = arith.constant 0 : index
    %c0_95 = arith.constant 0 : index
    %242 = vector.load %arg10[%c0_93, %c0_94, %c0_95] : memref<1x8x128xf32, #tpu.memory_space<vmem>>, vector<1x8x128xf32>
    %243 = vector.shape_cast %242 : vector<1x8x128xf32> to vector<8x128xf32>
    %244 = vector.shape_cast %241 : vector<8x128xf32> to vector<1x8x128xf32>
    tpu.vector_store %arg10[%c0_93, %c0_94, %c0_95], %244 {strides = array<i32>} : memref<1x8x128xf32, #tpu.memory_space<vmem>>, vector<1x8x128xf32>,
    %c0_96 = arith.constant 0 : index
    %c0_97 = arith.constant 0 : index
    %c0_98 = arith.constant 0 : index
    %245 = vector.load %arg11[%c0_96, %c0_97, %c0_98] : memref<1x8x128xf32, #tpu.memory_space<vmem>>, vector<1x8x128xf32>
    %246 = vector.shape_cast %245 : vector<1x8x128xf32> to vector<8x128xf32>
    %247 = arith.addf %246, %3 : vector<8x128xf32>
    %c0_99 = arith.constant 0 : index
    %c0_100 = arith.constant 0 : index
    %c0_101 = arith.constant 0 : index
    %248 = vector.load %arg11[%c0_99, %c0_100, %c0_101] : memref<1x8x128xf32, #tpu.memory_space<vmem>>, vector<1x8x128xf32>
    %249 = vector.shape_cast %248 : vector<1x8x128xf32> to vector<8x128xf32>
    %250 = vector.shape_cast %247 : vector<8x128xf32> to vector<1x8x128xf32>
    tpu.vector_store %arg11[%c0_99, %c0_100, %c0_101], %250 {strides = array<i32>} : memref<1x8x128xf32, #tpu.memory_space<vmem>>, vector<1x8x128xf32>,
    return
  }
  func.func @transform_0(%arg0: i32, %arg1: i32) -> (i32, i32) {
    %c1_i32 = arith.constant 1 : i32
    %0 = arith.muli %arg0, %c1_i32 : i32
    %1 = arith.addi %0, %arg1 : i32
    %c0_i32 = arith.constant 0 : i32
    %c0_i32_0 = arith.constant 0 : i32
    return %1, %c0_i32 : i32, i32
  }
  func.func @transform_1(%arg0: i32, %arg1: i32) -> (i32, i32) {
    %c1_i32 = arith.constant 1 : i32
    %0 = arith.muli %arg0, %c1_i32 : i32
    %1 = arith.addi %0, %arg1 : i32
    %c0_i32 = arith.constant 0 : i32
    %c0_i32_0 = arith.constant 0 : i32
    return %1, %c0_i32 : i32, i32
  }
  func.func @transform_2(%arg0: i32, %arg1: i32) -> (i32, i32) {
    %c1_i32 = arith.constant 1 : i32
    %0 = arith.muli %arg0, %c1_i32 : i32
    %1 = arith.addi %0, %arg1 : i32
    %c0_i32 = arith.constant 0 : i32
    %c0_i32_0 = arith.constant 0 : i32
    return %1, %c0_i32 : i32, i32
  }
  func.func @transform_3(%arg0: i32, %arg1: i32) -> (i32, i32) {
    %c1_i32 = arith.constant 1 : i32
    %0 = arith.muli %arg0, %c1_i32 : i32
    %1 = arith.addi %0, %arg1 : i32
    %c0_i32 = arith.constant 0 : i32
    %c0_i32_0 = arith.constant 0 : i32
    return %1, %c0_i32 : i32, i32
  }
  func.func @transform_4(%arg0: i32, %arg1: i32) -> (i32, i32) {
    %c1_i32 = arith.constant 1 : i32
    %0 = arith.muli %arg0, %c1_i32 : i32
    %1 = arith.addi %0, %arg1 : i32
    %c0_i32 = arith.constant 0 : i32
    %c0_i32_0 = arith.constant 0 : i32
    return %1, %c0_i32 : i32, i32
  }
  func.func @transform_5(%arg0: i32, %arg1: i32) -> (i32, i32) {
    %c1_i32 = arith.constant 1 : i32
    %0 = arith.muli %arg0, %c1_i32 : i32
    %1 = arith.addi %0, %arg1 : i32
    %c0_i32 = arith.constant 0 : i32
    %c0_i32_0 = arith.constant 0 : i32
    return %1, %c0_i32 : i32, i32
  }
  func.func @transform_6(%arg0: i32, %arg1: i32) -> (i32, i32) {
    %c1_i32 = arith.constant 1 : i32
    %0 = arith.muli %arg0, %c1_i32 : i32
    %1 = arith.addi %0, %arg1 : i32
    %c0_i32 = arith.constant 0 : i32
    %c0_i32_0 = arith.constant 0 : i32
    return %1, %c0_i32 : i32, i32
  }
  func.func @transform_7(%arg0: i32, %arg1: i32) -> (i32, i32, i32) {
    %c0_i32 = arith.constant 0 : i32
    %c0_i32_0 = arith.constant 0 : i32
    %c0_i32_1 = arith.constant 0 : i32
    return %arg0, %c0_i32, %c0_i32_0 : i32, i32, i32
  }
  func.func @transform_8(%arg0: i32, %arg1: i32) -> (i32, i32, i32) {
    %c0_i32 = arith.constant 0 : i32
    %c0_i32_0 = arith.constant 0 : i32
    %c0_i32_1 = arith.constant 0 : i32
    return %arg0, %c0_i32, %c0_i32_0 : i32, i32, i32
  }
  func.func @transform_9(%arg0: i32, %arg1: i32) -> (i32, i32, i32) {
    %c0_i32 = arith.constant 0 : i32
    %c0_i32_0 = arith.constant 0 : i32
    %c0_i32_1 = arith.constant 0 : i32
    return %arg0, %c0_i32, %c0_i32_0 : i32, i32, i32
  }
}

</mosaic_0001>

<bundles_post_ra>
// kernel: tpu_custom_call.1
= control target key start
LH: loop header
LB: loop body
LE: loop exit
PB: predicated region body
PF: predicated region fallthrough
CT: control target
= control target key end

     0   :  { %s2208_s0 = inlined_call_operand.hbm [shape: f32[16,128], index: 0, kind: input, shape index: {}]   ;;  %s2209_s1 = inlined_call_operand.hbm [shape: f32[16,128], index: 1, kind: input, shape index: {}]   ;;  %s2210_s2 = inlined_call_operand.hbm [shape: f32[16,128], index: 2, kind: input, shape index: {}]   ;;  %s2211_s3 = inlined_call_operand.hbm [shape: f32[16,128], index: 3, kind: input, shape index: {}]   ;;  %s2212_s4 = inlined_call_operand.hbm [shape: f32[16,128], index: 4, kind: input, shape index: {}]   ;;  %s2213_s5 = inlined_call_operand.vmem [shape: f32[16,128], index: 5, kind: input, shape index: {}]   ;;  %s2214_s6 = inlined_call_operand.hbm [shape: f32[16,128], index: 6, kind: input, shape index: {}]   ;;  %s2215_s7 = inlined_call_operand.hbm [shape: f32[2,8,128], index: 7, kind: output, shape index: {0}]   ;;  %s2216_s8 = inlined_call_operand.hbm [shape: f32[2,8,128], index: 8, kind: output, shape index: {1}]   ;;  %s2217_s9 = inlined_call_operand.hbm [shape: f32[2,8,128], index: 9, kind: output, shape index: {2}]  }
   0x1   :  { %2233 = sst [smem:[#allocation30_spill]] %s2209_s1 }
   0x2   :  { %2234 = sst [smem:[#allocation31_spill]] %s2211_s3 }
   0x3   :  { %2235 = sst [smem:[#allocation32_spill]] %s2215_s7 }
   0x4   :  { %2236 = sst [smem:[#allocation33_spill]] %s2217_s9 }
   0x5   :  { %15 = vsyncpa [#allocation3], 0 }
   0x6   :  { %17 = vsyncpa [#allocation3 + $0x1], 0 }
   0x7   :  { %18 = vsyncpa [#allocation6], 0 }
   0x8   :  { %20 = vsyncpa [#allocation6 + $0x1], 0 }
   0x9   :  { %21 = vsyncpa [#allocation9], 0 }
   0xa   :  { %23 = vsyncpa [#allocation9 + $0x1], 0 }
   0xb   :  { %24 = vsyncpa [#allocation12], 0 }
   0xc   :  { %26 = vsyncpa [#allocation12 + $0x1], 0 }
   0xd   :  { %27 = vsyncpa [#allocation4], 0 }
   0xe   :  { %29 = vsyncpa [#allocation4 + $0x1], 0 }
   0xf   :  { %30 = vsyncpa [#allocation15], 0 }
  0x10   :  { %32 = vsyncpa [#allocation15 + $0x1], 0  ;;  %s1664_s30 = smov 0   ;;  %s1666_s10 = smov 0  }
  0x11   :  { %s1668_s11 = smov 0   ;;  %s1670_s12 = smov 0  }
  0x12   :  { %s1672_s13 = smov 0   ;;  %s1674_s14 = smov 0  }
  0x13 LB: > { %2237 = sst [smem:[#allocation23_spill]] %s1583_s30  ;;  %s1695_s15 = sadd.s32 4294967295, %s1603_s14   ;;  %s1603_s14 = sphi %s1674_s14, %s38_s14   ;;  %s1599_s13 = sphi %s1672_s13, %s2275_s13   ;;  %s1595_s12 = sphi %s1670_s12, %s2274_s12   ;;  %s1591_s11 = sphi %s1668_s11, %s2273_s11   ;;  %s1587_s10 = sphi %s1666_s10, %s2277_s10   ;;  %s1583_s30 = sphi %s1664_s30, %s2276_s30  }
  0x14   : > { %2238 = sst [smem:[#allocation24_spill]] %s1591_s11  ;;  %s2218_s16 = sadd.s32 4294967294, %s1603_s14  }
  0x15   : > { %2239 = sst [smem:[#allocation25_spill]] %s1599_s13  ;;  %s50_s17 = sadd.s32 1, %s1599_s13 }
  0x16   : > { %2240 = sst [smem:[#allocation26_spill]] %s1603_s14  ;;  %s59_s18 = sadd.s32 1, %s1591_s11 }
  0x17   : > { %p52_p0 = scmp.ge.s32.totalorder %s50_s17, 2  ;;  %p66_p1 = scmp.ne.s32.totalorder %s1591_s11, %s1587_s10 }
  0x18   : > { %p67_p2 = scmp.eq.s32.totalorder %s1603_s14, 0  ;;  %p72_p3 = scmp.ne.s32.totalorder %s1587_s10, %s1583_s30 }
  0x19   : > { %s2279_s17 = smov (%p52_p0, %s50_s17), 0  ;;  %p73_p5 = scmp.eq.s32.totalorder %s1695_s15, 0 }
  0x1a   : > { %2241 = sst [smem:[#allocation27_spill]] %s2279_s17  ;;  %p1707_p4 = por %p67_p2, %p66_p1 }
  0x1b   : > { %s56_s20 = ssub.s32 %s1599_s13, %s2279_s17  ;;  %p264_p6 = scmp.eq.s32.totalorder %s1695_s15, 1 }
  0x1c   : > { %p57_p7 = scmp.eq.s32.totalorder %s56_s20, 0  ;;  %p1715_p8 = por %p73_p5, %p72_p3 }
  0x1d   : > { %p1719_p9 = por %p264_p6, %p66_p1  ;;  %p270_p10 = scmp.eq.s32.totalorder %s2218_s16, 1 }
  0x1e   : > { %s2243_s21 = scalar_select %p1715_p8, 1, 0 }
  0x1f   : > { %s2244_s22 = scalar_select %p1719_p9, 1, 0 }
  0x20   : > { %s1726_s23 = scalar_select %p57_p7, %s1591_s11, %s59_s18  }
  0x21   : > { %p1728_p11 = por %p270_p10, %p72_p3  ;;  %p1190_p13 = scmp.lt.s32.totalorder %s1603_s14, 2 }
  0x22   : > { %2245 = sst [smem:[#allocation28_spill]] %s1726_s23  ;;  %s1735_s25 = sand.u32 1, %s1591_s11  }
  0x23   : > { %s2246_s24 = scalar_select %p1728_p11, 1, 0 }
  0x24   : > { %s1738_s26 = sshll.u32 %s1735_s25, 3  ;;  %s1741_s27 = sshll.u32 %s1599_s13, 7 }
  0x25   : > { %2247 = sst [smem:[#allocation29_spill]] %s2246_s24  ;;  %p1745_p0 = pnand %p1190_p13, %p1707_p4 }
  0x26   : > { %s2224_s29 = sand.u32 1, %s1603_s14   ;;  %s2249_s1 = sld [smem:[#allocation30_spill]] }
  0x27   : > { %s2248_s28 = scalar_select %p1745_p0, 1, 0 }
  0x28   : > { %s365_s17 = scalar_lea.vmem [#allocation5], %s1738_s26  ;;  %s1763_s19 = scalar_lea.sflag [#allocation6], %s2224_s29 }
  0x29   : > { %s373_s13 = sshll.u32 %s365_s17, 4  ;;  %p1769_p4 = pneg %p1745_p0  ;;  %s1758_s13 = int_to_ptr.vmem [resolvable:$true] %s373_s13 }
  0x2c   : > { %s1754_s16 = scalar_lea.hbm %s2249_s1, %s1741_s27  ;;  %s1274_s11 = scalar_lea.hbm %s2249_s1, 256 }
  0x2d   : > { %s1269_s23 = scalar_lea.hbm %s1754_s16, 128  ;;  %p1275_p7 = scmp.lt.u32.totalorder %s1754_s16, %s2249_s1 }
  0x2e   : > { %p1270_p3 = scmp.ne.s32.totalorder %s1754_s16, %s1269_s23  ;;  %p1276_p10 = scmp.lt.u32.totalorder %s1274_s11, %s1269_s23 }
  0x2f   : > { %p1278_p12 = scmp.lt.u32.totalorder %s1269_s23, %s1754_s16 }
  0x30   : > { %p1272_p5 = pnand %p1769_p4, %p1270_p3  ;;  %p1277_p13 = por %p1276_p10, %p1275_p7 }
  0x32   : > { %p1273_p6 = pneg %p1272_p5  ;;  %p1279_p1 = por %p1278_p12, %p1277_p13 }
  0x34   : > { %p1280_p2 = pnand %p1279_p1, %p1273_p6 }
  0x36   : > { %1283 = shalt.err (!%p1280_p2)
}
  0x37   : > { %s1284_s29 = scalar_lea.vmem %s1758_s13, 128  ;;  %s1605_s20 = smov [#allocation5]  }
  0x38   : > { %p1285_p3 = scmp.ne.s32.totalorder %s1758_s13, %s1284_s29  ;;  %s1289_s17 = sshll.u32 %s1605_s20, 4  ;;  %s1290_s17 = int_to_ptr.vmem [resolvable:$false] %s1289_s17 }
  0x39   : > { %s1291_s30 = scalar_lea.vmem %s1290_s17, 256  ;;  %p1292_p9 = scmp.lt.s32.totalorder %s1758_s13, %s1290_s17 }
  0x3a   : > { %p1287_p5 = pnand %p1285_p3, %p1769_p4  ;;  %p1293_p8 = scmp.lt.s32.totalorder %s1291_s30, %s1284_s29 }
  0x3c   : > { %p1288_p11 = pneg %p1287_p5  ;;  %p1294_p7 = por %p1293_p8, %p1292_p9 }
  0x3e   : > { %p1295_p10 = pnand %p1294_p7, %p1288_p11 }
  0x40   : > { %1298 = shalt.err (!%p1295_p10)
}
  0x41   : > { %1167 = dma.hbm_to_vmem [thread:$0]  (!%p1745_p0), %s1754_s16, 128, %s1758_s13, %s1763_s19  }
  0x42   : > { %p2251_p12 = scmp.lt.s32.totalorder %s1603_s14, 3  ;;  %p2252_p1 = scmp.ge.s32.totalorder %s1603_s14, 1 }
  0x43   : > { %s2254_s3 = sld [smem:[#allocation31_spill]]  ;;  %s403_s20 = scalar_lea.vmem [#allocation8], %s1738_s26 }
  0x44   : > { %p1797_p2 = pnand %p2252_p1, %p2251_p12  ;;  %s411_s17 = sshll.u32 %s403_s20, 4  ;;  %s412_s17 = int_to_ptr.vmem [resolvable:$true] %s411_s17 }
  0x45   : > { %s2255_s30 = sand.u32 1, %s1603_s14  }
  0x46   : > { %s2253_s11 = scalar_select %p1797_p2, 1, 0 }
  0x47   : > { %s1810_s13 = scalar_lea.sflag [#allocation9], %s2255_s30 }
  0x49   : > { %s1805_s29 = scalar_lea.hbm %s2254_s3, %s1741_s27  ;;  %s1304_s23 = scalar_lea.hbm %s2254_s3, 256 }
  0x4a   : > { %s1299_s16 = scalar_lea.hbm %s1805_s29, 128  ;;  %p1305_p6 = scmp.lt.u32.totalorder %s1805_s29, %s2254_s3 }
  0x4b   : > { %p1300_p8 = scmp.ne.s32.totalorder %s1805_s29, %s1299_s16  ;;  %p1306_p13 = scmp.lt.u32.totalorder %s1304_s23, %s1299_s16 }
  0x4c   : > { %p1308_p5 = scmp.lt.u32.totalorder %s1299_s16, %s1805_s29 }
  0x4d   : > { %p1302_p9 = pnand %p1300_p8, %p1769_p4  ;;  %p1307_p3 = por %p1306_p13, %p1305_p6 }
  0x4f   : > { %p1303_p11 = pneg %p1302_p9  ;;  %p1309_p7 = por %p1308_p5, %p1307_p3 }
  0x51   : > { %p1310_p10 = pnand %p1309_p7, %p1303_p11 }
  0x53   : > { %1313 = shalt.err (!%p1310_p10)
}
  0x54   : > { %s1314_s20 = scalar_lea.vmem %s412_s17, 128  ;;  %s1606_s30 = smov [#allocation8]  }
  0x55   : > { %p1315_p12 = scmp.ne.s32.totalorder %s412_s17, %s1314_s20  ;;  %s1319_s14 = sshll.u32 %s1606_s30, 4  ;;  %s1320_s14 = int_to_ptr.vmem [resolvable:$false] %s1319_s14 }
  0x56   : > { %s1321_s1 = scalar_lea.vmem %s1320_s14, 256  ;;  %p1322_p9 = scmp.lt.s32.totalorder %s412_s17, %s1320_s14 }
  0x57   : > { %p1317_p1 = pnand %p1315_p12, %p1769_p4  ;;  %p1323_p2 = scmp.lt.s32.totalorder %s1321_s1, %s1314_s20 }
  0x59   : > { %p1318_p8 = pneg %p1317_p1  ;;  %p1324_p0 = por %p1323_p2, %p1322_p9 }
  0x5b   : > { %p1325_p6 = pnand %p1324_p0, %p1318_p8 }
  0x5d   : > { %1328 = shalt.err (!%p1325_p6)
}
  0x5e   : > { %p2256_p13 = scmp.ne.s32.totalorder %s2248_s28, 0  ;;  %s1834_s16 = scalar_lea.hbm %s2208_s0, %s1741_s27 }
  0x5f   : > { %s346_s14 = scalar_lea.vmem [#allocation2], %s1738_s26  ;;  %s343_s24 = scalar_lea.sflag [#allocation3], %s1735_s25 }
  0x60   : > { %1173 = dma.hbm_to_vmem [thread:$0]  (!%p2256_p13), %s1805_s29, 128, %s412_s17, %s1810_s13  }
  0x61   : > { %s354_s23 = sshll.u32 %s346_s14, 4  ;;  %s1329_s20 = scalar_lea.hbm %s1834_s16, 128  ;;  %s355_s23 = int_to_ptr.vmem [resolvable:$true] %s354_s23 }
  0x62   : > { %p1330_p0 = scmp.ne.s32.totalorder %s1834_s16, %s1329_s20  ;;  %s1334_s17 = scalar_lea.hbm %s2208_s0, 256 }
  0x63   : > { %p1335_p3 = scmp.lt.u32.totalorder %s1834_s16, %s2208_s0  ;;  %p1336_p5 = scmp.lt.u32.totalorder %s1334_s17, %s1329_s20 }
  0x64   : > { %p1332_p2 = pnand %p1330_p0, %p1769_p4  ;;  %p1338_p10 = scmp.lt.u32.totalorder %s1329_s20, %s1834_s16 }
  0x65   : > { %p1337_p7 = por %p1336_p5, %p1335_p3 }
  0x66   : > { %p1333_p11 = pneg %p1332_p2 }
  0x67   : > { %p1339_p12 = por %p1338_p10, %p1337_p7 }
  0x69   : > { %p1340_p1 = pnand %p1339_p12, %p1333_p11 }
  0x6b   : > { %1343 = shalt.err (!%p1340_p1)
}
  0x6c   : > { %s1344_s9 = scalar_lea.vmem %s355_s23, 128  ;;  %s1607_s14 = smov [#allocation2]  }
  0x6d   : > { %p1345_p8 = scmp.ne.s32.totalorder %s355_s23, %s1344_s9  ;;  %s1349_s3 = sshll.u32 %s1607_s14, 4  ;;  %s1350_s3 = int_to_ptr.vmem [resolvable:$false] %s1349_s3 }
  0x6e   : > { %s1351_s30 = scalar_lea.vmem %s1350_s3, 256  ;;  %p1352_p0 = scmp.lt.s32.totalorder %s355_s23, %s1350_s3 }
  0x6f   : > { %p1347_p9 = pnand %p1345_p8, %p1769_p4  ;;  %p1353_p2 = scmp.lt.s32.totalorder %s1351_s30, %s1344_s9 }
  0x71   : > { %p1348_p6 = pneg %p1347_p9  ;;  %p1354_p13 = por %p1353_p2, %p1352_p0 }
  0x73   : > { %p1355_p3 = pnand %p1354_p13, %p1348_p6 }
  0x75   : > { %1358 = shalt.err (!%p1355_p3)
}
  0x76   : > { %p2257_p5 = scmp.ne.s32.totalorder %s2248_s28, 0  ;;  %s1859_s17 = scalar_lea.hbm %s2210_s2, %s1741_s27 }
  0x77   : > { %s384_s3 = scalar_lea.vmem [#allocation7], %s1738_s26  ;;  %s1359_s7 = scalar_lea.hbm %s1859_s17, 128 }
  0x78   : > { %1164 = dma.hbm_to_vmem [thread:$0]  (!%p2257_p5), %s1834_s16, 128, %s355_s23, %s343_s24  }
  0x79   : > { %s392_s1 = sshll.u32 %s384_s3, 4  ;;  %p1360_p13 = scmp.ne.s32.totalorder %s1859_s17, %s1359_s7  ;;  %s393_s1 = int_to_ptr.vmem [resolvable:$true] %s392_s1 }
  0x7a   : > { %s1364_s16 = scalar_lea.hbm %s2210_s2, 256  ;;  %p1365_p10 = scmp.lt.u32.totalorder %s1859_s17, %s2210_s2 }
  0x7b   : > { %p1362_p11 = pnand %p1360_p13, %p1769_p4  ;;  %p1366_p12 = scmp.lt.u32.totalorder %s1364_s16, %s1359_s7 }
  0x7c   : > { %p1368_p8 = scmp.lt.u32.totalorder %s1359_s7, %s1859_s17 }
  0x7d   : > { %p1363_p7 = pneg %p1362_p11  ;;  %p1367_p1 = por %p1366_p12, %p1365_p10 }
  0x7f   : > { %p1369_p9 = por %p1368_p8, %p1367_p1 }
  0x81   : > { %p1370_p6 = pnand %p1369_p9, %p1363_p7 }
  0x83   : > { %1373 = shalt.err (!%p1370_p6)
}
  0x84   : > { %s1374_s30 = scalar_lea.vmem %s393_s1, 128  ;;  %s1608_s20 = smov [#allocation7]  }
  0x85   : > { %p1375_p0 = scmp.ne.s32.totalorder %s393_s1, %s1374_s30  ;;  %s1379_s29 = sshll.u32 %s1608_s20, 4  ;;  %s1380_s29 = int_to_ptr.vmem [resolvable:$false] %s1379_s29 }
  0x86   : > { %s1381_s3 = scalar_lea.vmem %s1380_s29, 256  ;;  %p1382_p13 = scmp.lt.s32.totalorder %s393_s1, %s1380_s29 }
  0x87   : > { %p1377_p2 = pnand %p1375_p0, %p1769_p4  ;;  %p1383_p11 = scmp.lt.s32.totalorder %s1381_s3, %s1374_s30 }
  0x89   : > { %p1378_p3 = pneg %p1377_p2  ;;  %p1384_p5 = por %p1383_p11, %p1382_p13 }
  0x8b   : > { %p1385_p10 = pnand %p1384_p5, %p1378_p3 }
  0x8d   : > { %1388 = shalt.err (!%p1385_p10)
}
  0x8e   : > { %p2258_p12 = scmp.ne.s32.totalorder %s2248_s28, 0  ;;  %s1884_s14 = scalar_lea.hbm %s2212_s4, %s1741_s27 }
  0x8f   : > { %s422_s16 = scalar_lea.vmem [#allocation10], %s1738_s26  ;;  %s1389_s24 = scalar_lea.hbm %s1884_s14, 128 }
  0x90   : > { %1170 = dma.hbm_to_vmem [thread:$0]  (!%p2258_p12), %s1859_s17, 128, %s393_s1, %s1763_s19  }
  0x91   : > { %s430_s23 = sshll.u32 %s422_s16, 4  ;;  %p1390_p5 = scmp.ne.s32.totalorder %s1884_s14, %s1389_s24  ;;  %s431_s23 = int_to_ptr.vmem [resolvable:$true] %s430_s23 }
  0x92   : > { %s1394_s19 = scalar_lea.hbm %s2212_s4, 256  ;;  %p1395_p8 = scmp.lt.u32.totalorder %s1884_s14, %s2212_s4 }
  0x93   : > { %p1392_p7 = pnand %p1390_p5, %p1769_p4  ;;  %p1396_p9 = scmp.lt.u32.totalorder %s1394_s19, %s1389_s24 }
  0x94   : > { %p1398_p0 = scmp.lt.u32.totalorder %s1389_s24, %s1884_s14 }
  0x95   : > { %p1393_p1 = pneg %p1392_p7  ;;  %p1397_p6 = por %p1396_p9, %p1395_p8 }
  0x97   : > { %p1399_p2 = por %p1398_p0, %p1397_p6 }
  0x99   : > { %p1400_p3 = pnand %p1399_p2, %p1393_p1 }
  0x9b   : > { %1403 = shalt.err (!%p1400_p3)
}
  0x9c   : > { %s1404_s29 = scalar_lea.vmem %s431_s23, 128  ;;  %s1609_s3 = smov [#allocation10]  }
  0x9d   : > { %p1405_p13 = scmp.ne.s32.totalorder %s431_s23, %s1404_s29  ;;  %s1409_s7 = sshll.u32 %s1609_s3, 4  ;;  %s1410_s7 = int_to_ptr.vmem [resolvable:$false] %s1409_s7 }
  0x9e   : > { %s1411_s9 = scalar_lea.vmem %s1410_s7, 256  ;;  %p1412_p5 = scmp.lt.s32.totalorder %s431_s23, %s1410_s7 }
  0x9f   : > { %p1407_p11 = pnand %p1405_p13, %p1769_p4  ;;  %p1413_p7 = scmp.lt.s32.totalorder %s1411_s9, %s1404_s29 }
  0xa1   : > { %p1408_p10 = pneg %p1407_p11  ;;  %p1414_p12 = por %p1413_p7, %p1412_p5 }
  0xa3   : > { %p1415_p8 = pnand %p1414_p12, %p1408_p10 }
  0xa5   : > { %1418 = shalt.err (!%p1415_p8)
}
  0xa6   : > { %p2259_p9 = scmp.ne.s32.totalorder %s2248_s28, 0  ;;  %s1909_s30 = scalar_lea.hbm %s2214_s6, %s1741_s27 }
  0xa7   : > { %s450_s20 = scalar_lea.vmem [#allocation11], %s1738_s26  ;;  %s447_s17 = scalar_lea.sflag [#allocation12], %s1735_s25 }
  0xa8   : > { %1176 = dma.hbm_to_vmem [thread:$0]  (!%p2259_p9), %s1884_s14, 128, %s431_s23, %s1810_s13  }
  0xa9   : > { %s458_s19 = sshll.u32 %s450_s20, 4  ;;  %s1419_s1 = scalar_lea.hbm %s1909_s30, 128  ;;  %s459_s19 = int_to_ptr.vmem [resolvable:$true] %s458_s19 }
  0xaa   : > { %p1420_p12 = scmp.ne.s32.totalorder %s1909_s30, %s1419_s1  ;;  %s1424_s14 = scalar_lea.hbm %s2214_s6, 256 }
  0xab   : > { %p1425_p0 = scmp.lt.u32.totalorder %s1909_s30, %s2214_s6  ;;  %p1426_p2 = scmp.lt.u32.totalorder %s1424_s14, %s1419_s1 }
  0xac   : > { %p1422_p1 = pnand %p1420_p12, %p1769_p4  ;;  %p1428_p13 = scmp.lt.u32.totalorder %s1419_s1, %s1909_s30 }
  0xad   : > { %p1427_p3 = por %p1426_p2, %p1425_p0 }
  0xae   : > { %p1423_p6 = pneg %p1422_p1 }
  0xaf   : > { %p1429_p11 = por %p1428_p13, %p1427_p3 }
  0xb1   : > { %p1430_p10 = pnand %p1429_p11, %p1423_p6 }
  0xb3   : > { %1433 = shalt.err (!%p1430_p10)
}
  0xb4   : > { %s1434_s25 = scalar_lea.vmem %s459_s19, 128  ;;  %s1610_s26 = smov [#allocation11]  }
  0xb5   : > { %p1435_p5 = scmp.ne.s32.totalorder %s459_s19, %s1434_s25  ;;  %s1439_s3 = sshll.u32 %s1610_s26, 4  ;;  %s1440_s3 = int_to_ptr.vmem [resolvable:$false] %s1439_s3 }
  0xb6   : > { %s1441_s7 = scalar_lea.vmem %s1440_s3, 256  ;;  %p1442_p12 = scmp.lt.s32.totalorder %s459_s19, %s1440_s3 }
  0xb7   : > { %p1437_p7 = pnand %p1435_p5, %p1769_p4  ;;  %p1443_p1 = scmp.lt.s32.totalorder %s1441_s7, %s1434_s25 }
  0xb9   : > { %p1438_p8 = pneg %p1437_p7  ;;  %p1444_p9 = por %p1443_p1, %p1442_p12 }
  0xbb   : > { %p1445_p0 = pnand %p1444_p9, %p1438_p8 }
  0xbd   : > { %1448 = shalt.err (!%p1445_p0)
}
  0xbe   : > { %p2260_p2 = scmp.ne.s32.totalorder %s2248_s28, 0  ;;  %p2261_p6 = scmp.ne.s32.totalorder %s2253_s11, 0 }
  0xbf   : > { %s1933_s18 = sand.u32 (!%p2261_p6), 1, %s1587_s10   ;;  %p2262_p4 = scmp.ne.s32.totalorder (!%p2261_p6), %s2243_s21, 0 }
  0xc0   : > { %1179 = dma.hbm_to_vmem [thread:$0]  (!%p2260_p2), %s1909_s30, 128, %s459_s19, %s447_s17  }
  0xc1   : > { %467 = sbr.rel (%p2261_p6) target bundleno = 348 (0x15c), region = 48  ;;  %s1936_s9 = sshll.u32 (!%p2261_p6), %s1933_s18, 3 }
  0xc2   : > { %s470_s16 = scalar_lea.sflag (!%p2261_p6), [#allocation3], %s1933_s18  ;;  %s473_s24 = scalar_lea.vmem (!%p2261_p6), [#allocation2], %s1936_s9 }
  0xc8   : > { %1558 = dma.done.wait (%p2262_p4), %s470_s16, 128  }
  0xc9   : > { %1560 = vsyncadd (%p2262_p4), %s470_s16, 4294967168  ;;  %s1945_s28 = sand.u32 1, %s1695_s15   ;;  %s482_s30 = scalar_lea.vmem [#allocation5], %s1936_s9 }
  0xca   : > { %s479_s11 = scalar_lea.sflag [#allocation6], %s1945_s28 }
  0xcb   : > { %1562 = dma.done.wait (%p2262_p4), %s479_s11, 256  }
  0xcc   : > { %1564 = vsyncadd (%p2262_p4), %s479_s11, 4294967040  ;;  %s491_s20 = scalar_lea.vmem [#allocation7], %s1936_s9  ;;  %s497_s19 = scalar_lea.sflag [#allocation9], %s1945_s28 }
  0xcd   : > { %s500_s17 = scalar_lea.vmem [#allocation8], %s1936_s9 }
  0xce   : > { %1566 = dma.done.wait (%p2262_p4), %s497_s19, 256  }
  0xcf   : > { %1568 = vsyncadd (%p2262_p4), %s497_s19, 4294967040  ;;  %s509_s15 = scalar_lea.vmem [#allocation10], %s1936_s9  ;;  %s515_s1 = scalar_lea.sflag [#allocation12], %s1933_s18 }
  0xd0   : > { %s518_s29 = scalar_lea.vmem [#allocation11], %s1936_s9 }
  0xd1   : > { %1570 = dma.done.wait (%p2262_p4), %s515_s1, 128  }
  0xd2   : > { %1572 = vsyncadd (%p2262_p4), %s515_s1, 4294967168  ;;  %p599_p9 = scmp.lt.s32.totalorder %s1595_s12, 1  ;;  %v1969_v0 = vld [vmem:[%s518_s29] sm:$0xff]  ;;  %v1976_v5 = vld [vmem:[%s509_s15] sm:$0xff]  ;;  %s592_s21 = scalar_lea.vmem [#allocation16], %s1936_s9 }
  0xd3   : > { %v766_v1 = vld [vmem:[%s500_s17] sm:$0xff]  ;;  %v1979_v6 = vadd.f32 1.0, %v1976_v5  ;;  %788 = vst [vmem:[%s592_s21] sm:$0xff] %v1969_v0  ;;  %v768_v7 = vld [vmem:[%s491_s20] sm:$0xff]  ;;  %s2015_s26 = sshll.u32 %s1595_s12, 7  ;;  %s585_s3 = scalar_lea.vmem [#allocation14], %s1936_s9 }
  0xd4   : > { %s600_s13 = scalar_select %p599_p9, %s1595_s12, 1  ;;  %v767_v2 = vmax.f32 %v766_v1, 1e-06  ;;  %v616_v3 = vld [vmem:[%s482_s30] sm:$0xff] }
  0xd5   : > { %v1974_v4 = vmax.f32 %v616_v3, 1e-06  ;;  %s826_s7 = sshll.u32 %s585_s3, 4  ;;  %s839_s16 = sshll.u32 %s592_s21, 4  ;;  %s2033_s7 = int_to_ptr.vmem [resolvable:$true] %s826_s7  ;;  %s2035_s16 = int_to_ptr.vmem [resolvable:$true] %s839_s16 }
  0xd6   : > { %s1131_s14 = sshll.u32 %s600_s13, 3  ;;  %1241 = vlog2.f32 %v767_v2  ;;  %s2031_s30 = scalar_lea.hbm %s2216_s8, %s2015_s26 }
  0xd7   : > { %s602_s25 = scalar_lea.vmem %s2213_s5, %s1131_s14  ;;  %1243 = vrcp.f32 %v767_v2  ;;  %vm619_vm0 = vcmp.lt.f32.partialorder %v1974_v4, 0.5  ;;  %v620_v9 = vadd.f32 1.0, %v1974_v4  ;;  %v1990_v10 = vadd.f32 %v1976_v5, %v1974_v4  ;;  %s2263_s17 = sld [smem:[#allocation33_spill]] }
  0xd8   : > { %v769_v8 = vld [vmem:[%s602_s25] sm:$0xff]  ;;  %1245 = vrcp.f32 %v1979_v6  ;;  %s795_s1 = scalar_lea.sflag [#allocation15], %s1945_s28  ;;  %s1449_s29 = scalar_lea.vmem %s2033_s7, 128 }
  0xd9   : > { %v770_v11 = vsub.f32 %v768_v7, %v769_v8  ;;  %v1995_v12 = vsel %vm619_vm0, %v620_v9, %v1974_v4  ;;  %vm702_vm1 = vcmp.lt.f32.partialorder %v1990_v10, 0.5  ;;  %v703_v13 = vadd.f32 1.0, %v1990_v10  ;;  %p1450_p3 = scmp.ne.s32.totalorder %s2033_s7, %s1449_s29  ;;  %p2264_p13 = scmp.ne.s32.totalorder %s2244_s22, 0 }
  0xda   : > { %1247 = vrcp.f32 %v1995_v12  ;;  %s1611_s13 = smov [#allocation14]  }
  0xdb   : > { %v773_v14 = vmul.f32 %v770_v11, %v770_v11  ;;  %v2003_v15 = vsel %vm702_vm1, %v703_v13, %v1990_v10  ;;  %p1451_p11 = pnand %p1450_p3, %p2264_p13  ;;  %s1453_s14 = sshll.u32 %s1611_s13, 4  ;;  %s1454_s14 = int_to_ptr.vmem [resolvable:$false] %s1453_s14 }
  0xdc   : > { %1249 = vrcp.f32 %v2003_v15  ;;  %s1455_s23 = scalar_lea.vmem %s1454_s14, 256  ;;  %p1456_p5 = scmp.lt.s32.totalorder %s2033_s7, %s1454_s14 }
  0xdd   : > { %s2043_s15 = scalar_lea.hbm %s2263_s17, %s2015_s26  ;;  %p1452_p10 = pneg %p1451_p11 }
  0xde   : > { %p1457_p7 = scmp.lt.s32.totalorder %s1455_s23, %s1449_s29 }
  0xe0   : > { %v1242_v16 = vpop.eup %1241  ;;  %p1458_p8 = por %p1457_p7, %p1456_p5 }
  0xe1   : > { %v1244_v17 = vpop.eup %1243  ;;  %v772_v18 = vmul.f32 0.6931472, %v1242_v16 }
  0xe2   : > { %v775_v19 = vmul.f32 %v1244_v17, %v773_v14  ;;  %v2006_v20 = vpop.eup %1245  ;;  %p1459_p12 = pnand %p1458_p8, %p1452_p10 }
  0xe3   : > { %v665_v22 = vmul.f32 3409662.8, %v2006_v20  ;;  %v681_v23 = vmul.f32 5040.0, %v2006_v20 }
  0xe4   : > { %v776_v21 = vadd.f32 %v775_v19, %v772_v18  ;;  %v2010_v24 = vpop.eup %1247 }
  0xe5   : > { %v623_v26 = vmul.f32 3409662.8, %v2010_v24  ;;  %v639_v27 = vmul.f32 5040.0, %v2010_v24  ;;  %v666_v28 = vadd.f32 4162388.0, %v665_v22  ;;  %v682_v29 = vadd.f32 13068.0, %v681_v23 }
  0xe6   : > { %v777_v25 = vmul.f32 0.5, %v776_v21  ;;  %v2021_v33 = vpop.eup %1249 }
  0xe7   : > { %v624_v31 = vadd.f32 4162388.0, %v623_v26  ;;  %v640_v32 = vadd.f32 13068.0, %v639_v27  ;;  %v667_v34 = vmul.f32 %v2006_v20, %v666_v28  ;;  %v683_v35 = vmul.f32 %v2006_v20, %v682_v29 }
  0xe8   : > { %v783_v30 = vmul.f32 %v777_v25, %v1969_v0  ;;  %v706_v40 = vmul.f32 3409662.8, %v2021_v33  ;;  %v722_v41 = vmul.f32 5040.0, %v2021_v33 }
  0xe9   : > { %v625_v36 = vmul.f32 %v2010_v24, %v624_v31  ;;  %v641_v37 = vmul.f32 %v2010_v24, %v640_v32  ;;  %v668_v38 = vadd.f32 2222880.5, %v667_v34  ;;  %v684_v39 = vadd.f32 13132.0, %v683_v35 }
  0xea   : > { %785 = vst [vmem:[%s585_s3] sm:$0xff] %v783_v30  ;;  %v707_v46 = vadd.f32 4162388.0, %v706_v40  ;;  %v723_v47 = vadd.f32 13068.0, %v722_v41 }
  0xeb   : > { %v626_v42 = vadd.f32 2222880.5, %v625_v36  ;;  %v642_v43 = vadd.f32 13132.0, %v641_v37  ;;  %v669_v44 = vmul.f32 %v2006_v20, %v668_v38  ;;  %v685_v45 = vmul.f32 %v2006_v20, %v684_v39 }
  0xec   : > { %1462 = shalt.err (!%p1459_p12)
}
  0xed   : > { %s1463_s27 = scalar_lea.hbm %s2031_s30, 128  ;;  %s1467_s3 = scalar_lea.hbm %s2216_s8, 256 }
  0xee   : > { %p1464_p1 = scmp.ne.s32.totalorder %s2031_s30, %s1463_s27  ;;  %p1468_p6 = scmp.lt.u32.totalorder %s2031_s30, %s2216_s8 }
  0xef   : > { %p1469_p4 = scmp.lt.u32.totalorder %s1467_s3, %s1463_s27  ;;  %p1471_p3 = scmp.lt.u32.totalorder %s1463_s27, %s2031_s30 }
  0xf0   : > { %p1465_p0 = pnand %p1464_p1, %p2264_p13 }
  0xf1   : > { %p1470_p9 = por %p1469_p4, %p1468_p6 }
  0xf2   : > { %p1466_p2 = pneg %p1465_p0 }
  0xf3   : > { %p1472_p11 = por %p1471_p3, %p1470_p9 }
  0xf5   : > { %p1473_p10 = pnand %p1472_p11, %p1466_p2 }
  0xf7   : > { %1476 = shalt.err (!%p1473_p10)
}
  0xf8   : > { %1156 = dma.vmem_to_hbm [thread:$0]  (%p2264_p13), %s2033_s7, 128, %s2031_s30, %s795_s1   ;;  %v627_v48 = vmul.f32 %v2010_v24, %v626_v42  ;;  %v643_v49 = vmul.f32 %v2010_v24, %v642_v43 }
  0xf9   : > { %s1477_s20 = scalar_lea.vmem %s2035_s16, 128  ;;  %s1612_s19 = smov [#allocation16]  }
  0xfa   : > { %p1478_p5 = scmp.ne.s32.totalorder %s2035_s16, %s1477_s20  ;;  %s1481_s29 = sshll.u32 %s1612_s19, 4  ;;  %s1482_s29 = int_to_ptr.vmem [resolvable:$false] %s1481_s29 }
  0xfb   : > { %s1483_s13 = scalar_lea.vmem %s1482_s29, 256  ;;  %p1484_p12 = scmp.lt.s32.totalorder %s2035_s16, %s1482_s29 }
  0xfc   : > { %p1479_p7 = pnand %p1478_p5, %p2264_p13  ;;  %p1485_p1 = scmp.lt.s32.totalorder %s1483_s13, %s1477_s20 }
  0xfe   : > { %p1480_p8 = pneg %p1479_p7  ;;  %p1486_p0 = por %p1485_p1, %p1484_p12 }
 0x100   : > { %p1487_p2 = pnand %p1486_p0, %p1480_p8 }
 0x102   : > { %1490 = shalt.err (!%p1487_p2)
}
 0x103   : > { %s1491_s7 = scalar_lea.hbm %s2043_s15, 128  ;;  %s1495_s23 = scalar_lea.hbm %s2263_s17, 256 }
 0x104   : > { %p1492_p6 = scmp.ne.s32.totalorder %s2043_s15, %s1491_s7  ;;  %p1496_p3 = scmp.lt.u32.totalorder %s2043_s15, %s2263_s17 }
 0x105   : > { %p1497_p11 = scmp.lt.u32.totalorder %s1495_s23, %s1491_s7  ;;  %p1499_p5 = scmp.lt.u32.totalorder %s1491_s7, %s2043_s15 }
 0x106   : > { %p1493_p4 = pnand %p1492_p6, %p2264_p13 }
 0x107   : > { %p1498_p10 = por %p1497_p11, %p1496_p3 }
 0x108   : > { %p1494_p9 = pneg %p1493_p4 }
 0x109   : > { %p1500_p7 = por %p1499_p5, %p1498_p10 }
 0x10b   : > { %p1501_p8 = pnand %p1500_p7, %p1494_p9 }
 0x10d   : > { %1504 = shalt.err (!%p1501_p8)
}
 0x10e   : > { %1157 = dma.vmem_to_hbm [thread:$0]  (%p2264_p13), %s2035_s16, 128, %s2043_s15, %s795_s1   ;;  %v670_v50 = vadd.f32 678289.7, %v669_v44  ;;  %v686_v51 = vadd.f32 6769.0, %v685_v45  ;;  %v708_v52 = vmul.f32 %v2021_v33, %v707_v46  ;;  %v724_v53 = vmul.f32 %v2021_v33, %v723_v47 }
 0x10f   : > { %v628_v54 = vadd.f32 678289.7, %v627_v48  ;;  %v644_v55 = vadd.f32 6769.0, %v643_v49  ;;  %v2117_v39 = vadd.f32 6.5, %v1995_v12  ;;  %v2125_v46 = vadd.f32 6.5, %v1979_v6 }
 0x110   : > { %v671_v56 = vmul.f32 %v2006_v20, %v670_v50  ;;  %v687_v57 = vmul.f32 %v2006_v20, %v686_v51  ;;  %v709_v58 = vadd.f32 2222880.5, %v708_v52  ;;  %v725_v59 = vadd.f32 13132.0, %v724_v53  ;;  %s2265_s1 = sld [smem:[#allocation32_spill]]  ;;  %s790_s3 = scalar_lea.sflag [#allocation4], %s1933_s18 }
 0x111   : > { %v629_v60 = vmul.f32 %v2010_v24, %v628_v54  ;;  %v645_v61 = vmul.f32 %v2010_v24, %v644_v55  ;;  %1251 = vlog2.f32 %v2117_v39  ;;  %v736_v48 = vadd.f32 6.5, %v2003_v15 }
 0x112   : > { %v672_v62 = vadd.f32 129347.26, %v671_v56  ;;  %v688_v63 = vadd.f32 1960.0, %v687_v57  ;;  %v710_v1 = vmul.f32 %v2021_v33, %v709_v58  ;;  %v726_v2 = vmul.f32 %v2021_v33, %v725_v59  ;;  %v613_v56 = vld [vmem:[%s473_s24] sm:$0xff]  ;;  %s578_s24 = scalar_lea.vmem [#allocation13], %s1936_s9  ;;  %s1613_s9 = smov [#allocation13]  }
 0x113   : > { %v630_v3 = vadd.f32 129347.26, %v629_v60  ;;  %v646_v7 = vadd.f32 1960.0, %v645_v61  ;;  %1253 = vlog2.f32 %v2125_v46  ;;  %s813_s28 = sshll.u32 %s578_s24, 4  ;;  %s1509_s11 = sshll.u32 %s1613_s9, 4  ;;  %s2159_s28 = int_to_ptr.vmem [resolvable:$true] %s813_s28  ;;  %s1510_s11 = int_to_ptr.vmem [resolvable:$false] %s1509_s11 }
 0x114   : > { %v673_v8 = vmul.f32 %v2006_v20, %v672_v62  ;;  %v689_v9 = vmul.f32 %v2006_v20, %v688_v63  ;;  %v711_v11 = vadd.f32 678289.7, %v710_v1  ;;  %v727_v13 = vadd.f32 6769.0, %v726_v2  ;;  %s1505_s12 = scalar_lea.vmem %s2159_s28, 128  ;;  %s1511_s20 = scalar_lea.vmem %s1510_s11, 256 }
 0x115   : > { %v631_v14 = vmul.f32 %v2010_v24, %v630_v3  ;;  %v647_v16 = vmul.f32 %v2010_v24, %v646_v7  ;;  %1255 = vlog2.f32 %v736_v48  ;;  %v614_v63 = vmax.f32 %v613_v56, 1e-06  ;;  %p1506_p12 = scmp.ne.s32.totalorder %s2159_s28, %s1505_s12  ;;  %p1512_p2 = scmp.lt.s32.totalorder %s2159_s28, %s1510_s11 }
 0x116   : > { %v674_v17 = vadd.f32 15784.881, %v673_v8  ;;  %v690_v18 = vadd.f32 322.0, %v689_v9  ;;  %v712_v19 = vmul.f32 %v2021_v33, %v711_v11  ;;  %v728_v21 = vmul.f32 %v2021_v33, %v727_v13  ;;  %s2157_s21 = scalar_lea.hbm %s2265_s1, %s2015_s26  ;;  %p1513_p6 = scmp.lt.s32.totalorder %s1511_s20, %s1505_s12 }
 0x117   : > { %v632_v22 = vadd.f32 15784.881, %v631_v14  ;;  %v648_v23 = vadd.f32 322.0, %v647_v16  ;;  %1257 = vlog2.f32 %v1974_v4  ;;  %v615_v9 = vmin.f32 %v614_v63, 0.999999  ;;  %p1507_p1 = pnand %p1506_p12, %p2264_p13 }
 0x118   : > { %v675_v25 = vmul.f32 %v2006_v20, %v674_v17  ;;  %v691_v26 = vmul.f32 %v2006_v20, %v690_v18  ;;  %v713_v27 = vadd.f32 129347.26, %v712_v19  ;;  %v729_v28 = vadd.f32 1960.0, %v728_v21  ;;  %p1514_p4 = por %p1513_p6, %p1512_p2 }
 0x119   : > { %v633_v29 = vmul.f32 %v2010_v24, %v632_v22  ;;  %v649_v30 = vmul.f32 %v2010_v24, %v648_v23  ;;  %1259 = vlog2.f32 %v1990_v10  ;;  %v1132_v13 = vadd.f32 -0.5, %v1995_v12  ;;  %p1508_p0 = pneg %p1507_p1 }
 0x11a   : > { %v692_v31 = vadd.f32 28.0, %v691_v26  ;;  %v714_v32 = vmul.f32 %v2021_v33, %v713_v27  ;;  %v676_v36 = vadd.f32 1203.8342, %v675_v25  ;;  %v730_v37 = vmul.f32 %v2021_v33, %v729_v28 }
 0x11b   : > { %v634_v34 = vadd.f32 1203.8342, %v633_v29  ;;  %v650_v35 = vadd.f32 28.0, %v649_v30  ;;  %v1252_v2 = vpop.eup %1251  ;;  %v1133_v18 = vadd.f32 -0.5, %v1979_v6  ;;  %v761_v19 = vsub.f32 1.0, %v615_v9  ;;  %p1515_p9 = pnand %p1514_p4, %p1508_p0 }
 0x11c   : > { %v715_v38 = vadd.f32 15784.881, %v714_v32  ;;  %v693_v41 = vmul.f32 %v2006_v20, %v692_v31  ;;  %v677_v44 = vmul.f32 %v2006_v20, %v676_v36  ;;  %v731_v45 = vadd.f32 322.0, %v730_v37 }
 0x11d   : > { %v651_v40 = vmul.f32 %v2010_v24, %v650_v35  ;;  %v635_v43 = vmul.f32 %v2010_v24, %v634_v34  ;;  %v1254_v11 = vpop.eup %1253  ;;  %v656_v14 = vmul.f32 0.6931472, %v1252_v2  ;;  %v1134_v23 = vadd.f32 -0.5, %v2003_v15 }
 0x11e   : > { %v716_v42 = vmul.f32 %v2021_v33, %v715_v38  ;;  %v694_v50 = vadd.f32 1.0, %v693_v41  ;;  %v678_v53 = vadd.f32 52.458332, %v677_v44  ;;  %v732_v54 = vmul.f32 %v2021_v33, %v731_v45 }
 0x11f   : > { %v652_v49 = vadd.f32 1.0, %v651_v40  ;;  %v636_v52 = vadd.f32 52.458332, %v635_v43  ;;  %v657_v21 = vmul.f32 %v1132_v13, %v656_v14  ;;  %v698_v22 = vmul.f32 0.6931472, %v1254_v11 }
 0x120   : > { %v717_v47 = vadd.f32 1203.8342, %v716_v42  ;;  %v679_v60 = vmul.f32 %v2006_v20, %v678_v53  ;;  %v733_v61 = vadd.f32 28.0, %v732_v54 }
 0x121   : > { %v748_v58 = vmul.f32 %v694_v50, %v652_v49  ;;  %v637_v59 = vmul.f32 %v2010_v24, %v636_v52  ;;  %v1256_v24 = vpop.eup %1255  ;;  %v658_v12 = vsub.f32 %v657_v21, %v2117_v39  ;;  %v699_v29 = vmul.f32 %v1133_v18, %v698_v22 }
 0x122   : > { %v718_v51 = vmul.f32 %v2021_v33, %v717_v47  ;;  %v680_v7 = vadd.f32 1.0, %v679_v60  ;;  %v734_v8 = vmul.f32 %v2021_v33, %v733_v61  ;;  %v1258_v17 = vpop.eup %1257  ;;  %v739_v25 = vmul.f32 0.6931472, %v1256_v24 }
 0x123   : > { %v638_v3 = vadd.f32 1.0, %v637_v59  ;;  %v660_v26 = vmul.f32 0.6931472, %v1258_v17  ;;  %v1260_v27 = vpop.eup %1259  ;;  %v700_v15 = vsub.f32 %v699_v29, %v2125_v46 }
 0x124   : > { %v719_v55 = vadd.f32 52.458332, %v718_v51  ;;  %v735_v16 = vadd.f32 1.0, %v734_v8  ;;  %v740_v30 = vmul.f32 %v1134_v23, %v739_v25  ;;  %v743_v6 = vmul.f32 0.6931472, %v1260_v27 }
 0x125   : > { %v746_v20 = vmul.f32 %v680_v7, %v638_v3  ;;  %v661_v31 = vsel %vm619_vm0, %v660_v26, 0.0 }
 0x126   : > { %v720_v57 = vmul.f32 %v2021_v33, %v719_v55  ;;  %v662_v34 = vsub.f32 %v658_v12, %v661_v31  ;;  %v741_v35 = vsub.f32 %v740_v30, %v736_v48  ;;  %v744_v36 = vsel %vm702_vm1, %v743_v6, 0.0 }
 0x127   : > { %v747_v33 = vmul.f32 %v746_v20, %v735_v16 }
 0x128   : > { %v721_v62 = vadd.f32 1.0, %v720_v57  ;;  %v745_v38 = vsub.f32 %v741_v35, %v744_v36  ;;  %v754_v39 = vadd.f32 %v700_v15, %v662_v34 }
 0x12a   : > { %v749_v1 = vmul.f32 %v748_v58, %v721_v62  ;;  %v755_v42 = vsub.f32 %v754_v39, %v745_v38 }
 0x12c   : > { %1261 = vrcp.f32 %v749_v1 }
 0x12d   : > { %1263 = vlog2.f32 %v615_v9 }
 0x12e   : > { %1265 = vlog2.f32 %v761_v19 }
 0x136   : > { %v1262_v28 = vpop.eup %1261 }
 0x137   : > { %v751_v32 = vmul.f32 %v1262_v28, %v747_v33  ;;  %v1264_v37 = vpop.eup %1263 }
 0x138   : > { %v1266_v40 = vpop.eup %1265  ;;  %v758_v41 = vmul.f32 0.6931472, %v1264_v37 }
 0x139   : > { %1267 = vlog2.f32 %v751_v32  ;;  %v763_v43 = vmul.f32 0.6931472, %v1266_v40 }
 0x13a   : > { %v759_v47 = vmul.f32 %v758_v41, %v1974_v4 }
 0x13b   : > { %v764_v48 = vmul.f32 %v763_v43, %v1976_v5 }
 0x143   : > { %v1268_v44 = vpop.eup %1267 }
 0x144   : > { %v753_v45 = vmul.f32 0.6931472, %v1268_v44 }
 0x146   : > { %v756_v46 = vadd.f32 %v755_v42, %v753_v45 }
 0x148   : > { %v760_v10 = vsub.f32 %v756_v46, %v759_v47 }
 0x14a   : > { %v765_v49 = vsub.f32 %v760_v10, %v764_v48 }
 0x14c   : > { %v779_v50 = vmul.f32 %v765_v49, %v1969_v0 }
 0x14e   : > { %781 = vst [vmem:[%s578_s24] sm:$0xff] %v779_v50 }
 0x14f   : > { %1518 = shalt.err (!%p1515_p9)
}
 0x150   : > { %s1519_s18 = scalar_lea.hbm %s2157_s21, 128  ;;  %s1523_s29 = scalar_lea.hbm %s2265_s1, 256 }
 0x151   : > { %p1520_p3 = scmp.ne.s32.totalorder %s2157_s21, %s1519_s18  ;;  %p1524_p5 = scmp.lt.u32.totalorder %s2157_s21, %s2265_s1 }
 0x152   : > { %p1525_p7 = scmp.lt.u32.totalorder %s1523_s29, %s1519_s18  ;;  %p1527_p12 = scmp.lt.u32.totalorder %s1519_s18, %s2157_s21 }
 0x153   : > { %p1521_p11 = pnand %p1520_p3, %p2264_p13 }
 0x154   : > { %p1526_p8 = por %p1525_p7, %p1524_p5 }
 0x155   : > { %p1522_p10 = pneg %p1521_p11 }
 0x156   : > { %p1528_p1 = por %p1527_p12, %p1526_p8 }
 0x158   : > { %p1529_p0 = pnand %p1528_p1, %p1522_p10 }
 0x15a   : > { %1532 = shalt.err (!%p1529_p0)
}
 0x15b   : > { %1155 = dma.vmem_to_hbm [thread:$0]  (%p2264_p13), %s2159_s28, 128, %s2157_s21, %s790_s3  }
 0x15c PF: > { %s2266_s30 = sld [smem:[#allocation23_spill]]  ;;  %s2267_s14 = sld [smem:[#allocation29_spill]] }
 0x15d   : > { %s2268_s23 = sld [smem:[#allocation26_spill]] }
 0x162   : > { %s851_s27 = sand.u32 1, %s2266_s30   ;;  %p2269_p2 = scmp.ne.s32.totalorder %s2267_s14, 0 }
 0x163   : > { %p2270_p6 = scmp.ge.s32.totalorder %s2268_s23, 2  ;;  %s852_s25 = scalar_lea.sflag [#allocation4], %s851_s27 }
 0x165   : > { %p1181_p4 = pnand %p2270_p6, %p2269_p2 }
 0x167   : > { %1574 = dma.done.wait (!%p1181_p4), %s852_s25, 128  }
 0x168   : > { %1576 = vsyncadd (!%p1181_p4), %s852_s25, 4294967168  ;;  %s2271_s24 = sadd.s32 4294967294, %s2268_s23  }
 0x169   : > { %s860_s16 = sand.u32 1, %s2271_s24  }
 0x16a   : > { %s861_s15 = scalar_lea.sflag [#allocation15], %s860_s16 }
 0x16b   : > { %1578 = dma.done.wait (!%p1181_p4), %s861_s15, 256  }
 0x16c   : > { %1580 = vsyncadd (!%p1181_p4), %s861_s15, 4294967040  ;;  %s38_s14 = sadd.s32 1, %s2268_s23   ;;  %s2272_s22 = sld [smem:[#allocation24_spill]] }
 0x16d   : > { %p35_p13 = scmp.ge.s32.totalorder %s38_s14, 4   ;;  %s2273_s11 = sld [smem:[#allocation28_spill]] }
 0x16e   : > { %s2274_s12 = sld [smem:[#allocation25_spill]]  ;;  %s2275_s13 = sld [smem:[#allocation27_spill]] }
 0x16f   : > { %s2276_s30 = smov %s1587_s10  ;;  %37 = sbr.rel (!%p35_p13) target bundleno = 19 (0x13), region = 193 }
 0x172   : > { %s2277_s10 = smov %s2272_s22 }
 0x176   :  { %875 = vsyncpa [#allocation3], 1 }
 0x177   :  { %877 = vsyncpa [#allocation3 + $0x1], 1 }
 0x178   :  { %878 = vsyncpa [#allocation6], 1 }
 0x179   :  { %880 = vsyncpa [#allocation6 + $0x1], 1 }
 0x17a   :  { %881 = vsyncpa [#allocation9], 1 }
 0x17b   :  { %883 = vsyncpa [#allocation9 + $0x1], 1 }
 0x17c   :  { %884 = vsyncpa [#allocation12], 1 }
 0x17d   :  { %886 = vsyncpa [#allocation12 + $0x1], 1 }
 0x17e   :  { %887 = vsyncpa [#allocation4], 1 }
 0x17f   :  { %889 = vsyncpa [#allocation4 + $0x1], 1 }
 0x180   :  { %890 = vsyncpa [#allocation15], 1 }
 0x181   :  { %892 = vsyncpa [#allocation15 + $0x1], 1 }

</bundles_post_ra>
